<compile_context>
chip_gen: v5e
topology: v5e:2x2
jax: 0.10.0
libtpu: 0.0.40
codegen_flags: <defaults>
</compile_context>

<pallas_src>
import functools

import jax
import jax.numpy as jnp
import numpy as np
from jax.experimental import pallas as pl
from jax.experimental.pallas import tpu as pltpu


def _ffm_kernel(idx_ref, emb_ref, out_ref, *, combos, pairs, vocab, tb):
    # idx_ref: SMEM (Bp, num_features) int32   (scalar prefetch, offsets already added)
    # emb_ref: VMEM (num_fields*vocab, 1, E)   (stacked embedding tables, resident)
    # out_ref: VMEM (tb, num_pairs*E)          (lane-dense output slab for this batch tile)
    bt = pl.program_id(0)

    # Gather each distinct (field, feature_pos) embedding row once per batch row,
    # assembling a (tb, E) block per combo so later math is vectorized over the tile.
    gathered = {}
    for (fld, pos) in combos:                 # static unroll over distinct gathers
        rows = []
        for t in range(tb):                   # static unroll over the batch tile
            r = fld * vocab + idx_ref[bt * tb + t, pos]   # scalar SMEM read -> row id
            rows.append(emb_ref[r])            # (1, E) dynamic read on leading axis
        gathered[(fld, pos)] = jnp.concatenate(rows, axis=0)   # (tb, E)

    # Field-aware pairwise products; one vmul of (tb, E) per pair.
    prods = [gathered[(lf, lp)] * gathered[(rf, rp)] for (lf, lp, rf, rp) in pairs]

    # Single lane-dense store for the whole tile: (tb, P*E).
    out_ref[...] = jnp.concatenate(prods, axis=1)


def ffm_forward(x_idx, emb_stack, field_idx, offsets, *, batch_tile=8):
    """x_idx: (B, num_features) int; emb_stack: (num_fields, vocab, E) float32.

    Returns (B, num_pairs, E), matching the PyTorch module's forward.
    """
    B, F = x_idx.shape
    num_fields, V, E = emb_stack.shape

    # Static pair table. For pair p = (i, j):
    #   left  = Embedding_{field_idx[j]}[ x[:, i] ]
    #   right = Embedding_{field_idx[i]}[ x[:, j] ]
    pairs = tuple(
        (int(field_idx[j]), i, int(field_idx[i]), j)
        for i in range(F - 1)
        for j in range(i + 1, F)
    )
    P = len(pairs)

    # Distinct (field, feature_pos) gathers, order-preserving (dedup).
    combos = []
    for (lf, lp, rf, rp) in pairs:
        for c in ((lf, lp), (rf, rp)):
            if c not in combos:
                combos.append(c)
    combos = tuple(combos)

    idx = x_idx.astype(jnp.int32) + jnp.asarray(offsets, jnp.int32)[None, :]

    TB = max(1, min(batch_tile, B))
    Bp = pl.cdiv(B, TB) * TB
    if Bp != B:
        # Padded rows use index 0 (always in-bounds); their outputs are sliced away.
        idx = jnp.concatenate([idx, jnp.zeros((Bp - B, F), jnp.int32)], axis=0)

    # Flatten tables to (num_fields*V, 1, E): dynamic indexing on the leading (untiled)
    # axis is the documented-safe gather path, and the block stays resident in VMEM.
    # TODO(synk): for large vocabularies keep tables in HBM (memory_space=pl.ANY) and
    # DMA-gather only the needed rows instead of holding the whole stack in VMEM.
    emb_rows = emb_stack.reshape(num_fields * V, 1, E)

    kernel = functools.partial(_ffm_kernel, combos=combos, pairs=pairs, vocab=V, tb=TB)
    out = pl.pallas_call(
        kernel,
        out_shape=jax.ShapeDtypeStruct((Bp, P * E), emb_stack.dtype),
        grid_spec=pltpu.PrefetchScalarGridSpec(
            num_scalar_prefetch=1,
            grid=(Bp // TB,),
            in_specs=[
                pl.BlockSpec((num_fields * V, 1, E), lambda b, idx_ref: (0, 0, 0)),
            ],
            out_specs=pl.BlockSpec((TB, P * E), lambda b, idx_ref: (b, 0)),
        ),
        compiler_params=pltpu.CompilerParams(dimension_semantics=("parallel",)),
    )(idx, emb_rows)

    # Layout plumbing only: lane-dense slab -> (B, num_pairs, E).
    return out[:B].reshape(B, P, E)


def ffm_reference(x_idx, emb_stack, field_idx, offsets):
    """Pure-JAX mirror of the PyTorch forward (for verification)."""
    B, F = x_idx.shape
    num_fields = emb_stack.shape[0]
    xoff = x_idx + jnp.asarray(offsets, x_idx.dtype)[None, :]
    xs = [emb_stack[f][xoff] for f in range(num_fields)]   # each (B, F, E)
    ix = []
    for i in range(F - 1):
        for j in range(i + 1, F):
            ix.append(xs[field_idx[j]][:, i] * xs[field_idx[i]][:, j])
    return jnp.stack(ix, axis=1)


if __name__ == "__main__":
    key = jax.random.PRNGKey(0)

    # Small config consistent with the module's __init__ / forward:
    field_dims = (7, 9, 5, 11)        # 4 features, shared vocab = 32
    field_idx = (0, 0, 1, 1, 2)       # per-feature field ids (+ sentinel); num_fields = field_idx[-1] = 2
    embed_dim = 16
    B = 16

    num_features = len(field_dims)
    num_fields = field_idx[-1]
    vocab = int(np.sum(field_dims))
    offsets = np.array((0, *np.cumsum(field_dims)[:-1]), dtype=np.int32)

    key, ke, kx = jax.random.split(key, 3)
    # Deterministic synthetic embedding tables (Xavier init replaced by scaled normal).
    emb_stack = jax.random.normal(ke, (num_fields, vocab, embed_dim), jnp.float32) * 0.1
    maxvals = jnp.asarray(field_dims, jnp.int32)[None, :]
    x_idx = jax.random.randint(kx, (B, num_features), 0, 10_000, dtype=jnp.int32) % maxvals

    out = ffm_forward(x_idx, emb_stack, field_idx, offsets, batch_tile=8)
    out = jax.block_until_ready(out)

    ref = ffm_reference(x_idx, emb_stack, field_idx, offsets)
    np.testing.assert_allclose(np.asarray(out), np.asarray(ref), rtol=1e-6, atol=1e-6)
    print("KERNEL_OK")
</pallas_src>

<mosaic_0001>
module attributes {stable_mosaic.version = 11 : i64} {
  func.func @_ffm_kernel(%arg0: i32, %arg1: memref<16x4xi32, #tpu.memory_space<smem>>, %arg2: memref<64x1x16xf32, #tpu.memory_space<vmem>>, %arg3: memref<8x96xf32, #tpu.memory_space<vmem>>) attributes {dimension_semantics = [#tpu.dimension_semantics<parallel>], iteration_bounds = array<i64: 2>, scalar_prefetch = 1 : i64, scratch_operands = 0 : i64, tpu.core_type = #tpu.core_type<tc>, window_params = [{pipeline_mode = #tpu.pipeline_mode<synchronous>, transform_indices = @transform_0, window_bounds = array<i64: 64, 1, 16>}, {transform_indices = @transform_1, window_bounds = array<i64: 8, 96>}]} {
    %c8_i32 = arith.constant 8 : i32
    %0 = arith.muli %arg0, %c8_i32 : i32
    %c0_i32 = arith.constant 0 : i32
    %1 = arith.addi %0, %c0_i32 : i32
    %2 = arith.index_cast %1 : i32 to index
    %c0 = arith.constant 0 : index
    %3 = memref.load %arg1[%2, %c0] : memref<16x4xi32, #tpu.memory_space<smem>>
    %c0_i32_0 = arith.constant 0 : i32
    %4 = arith.addi %c0_i32_0, %3 : i32
    %5 = arith.index_cast %4 : i32 to index
    %c0_1 = arith.constant 0 : index
    %c0_2 = arith.constant 0 : index
    %6 = vector.load %arg2[%5, %c0_1, %c0_2] : memref<64x1x16xf32, #tpu.memory_space<vmem>>, vector<1x1x16xf32>
    %7 = vector.shape_cast %6 : vector<1x1x16xf32> to vector<1x16xf32>
    %c8_i32_3 = arith.constant 8 : i32
    %8 = arith.muli %arg0, %c8_i32_3 : i32
    %c1_i32 = arith.constant 1 : i32
    %9 = arith.addi %8, %c1_i32 : i32
    %10 = arith.index_cast %9 : i32 to index
    %c0_4 = arith.constant 0 : index
    %11 = memref.load %arg1[%10, %c0_4] : memref<16x4xi32, #tpu.memory_space<smem>>
    %c0_i32_5 = arith.constant 0 : i32
    %12 = arith.addi %c0_i32_5, %11 : i32
    %13 = arith.index_cast %12 : i32 to index
    %c0_6 = arith.constant 0 : index
    %c0_7 = arith.constant 0 : index
    %14 = vector.load %arg2[%13, %c0_6, %c0_7] : memref<64x1x16xf32, #tpu.memory_space<vmem>>, vector<1x1x16xf32>
    %15 = vector.shape_cast %14 : vector<1x1x16xf32> to vector<1x16xf32>
    %c8_i32_8 = arith.constant 8 : i32
    %16 = arith.muli %arg0, %c8_i32_8 : i32
    %c2_i32 = arith.constant 2 : i32
    %17 = arith.addi %16, %c2_i32 : i32
    %18 = arith.index_cast %17 : i32 to index
    %c0_9 = arith.constant 0 : index
    %19 = memref.load %arg1[%18, %c0_9] : memref<16x4xi32, #tpu.memory_space<smem>>
    %c0_i32_10 = arith.constant 0 : i32
    %20 = arith.addi %c0_i32_10, %19 : i32
    %21 = arith.index_cast %20 : i32 to index
    %c0_11 = arith.constant 0 : index
    %c0_12 = arith.constant 0 : index
    %22 = vector.load %arg2[%21, %c0_11, %c0_12] : memref<64x1x16xf32, #tpu.memory_space<vmem>>, vector<1x1x16xf32>
    %23 = vector.shape_cast %22 : vector<1x1x16xf32> to vector<1x16xf32>
    %c8_i32_13 = arith.constant 8 : i32
    %24 = arith.muli %arg0, %c8_i32_13 : i32
    %c3_i32 = arith.constant 3 : i32
    %25 = arith.addi %24, %c3_i32 : i32
    %26 = arith.index_cast %25 : i32 to index
    %c0_14 = arith.constant 0 : index
    %27 = memref.load %arg1[%26, %c0_14] : memref<16x4xi32, #tpu.memory_space<smem>>
    %c0_i32_15 = arith.constant 0 : i32
    %28 = arith.addi %c0_i32_15, %27 : i32
    %29 = arith.index_cast %28 : i32 to index
    %c0_16 = arith.constant 0 : index
    %c0_17 = arith.constant 0 : index
    %30 = vector.load %arg2[%29, %c0_16, %c0_17] : memref<64x1x16xf32, #tpu.memory_space<vmem>>, vector<1x1x16xf32>
    %31 = vector.shape_cast %30 : vector<1x1x16xf32> to vector<1x16xf32>
    %c8_i32_18 = arith.constant 8 : i32
    %32 = arith.muli %arg0, %c8_i32_18 : i32
    %c4_i32 = arith.constant 4 : i32
    %33 = arith.addi %32, %c4_i32 : i32
    %34 = arith.index_cast %33 : i32 to index
    %c0_19 = arith.constant 0 : index
    %35 = memref.load %arg1[%34, %c0_19] : memref<16x4xi32, #tpu.memory_space<smem>>
    %c0_i32_20 = arith.constant 0 : i32
    %36 = arith.addi %c0_i32_20, %35 : i32
    %37 = arith.index_cast %36 : i32 to index
    %c0_21 = arith.constant 0 : index
    %c0_22 = arith.constant 0 : index
    %38 = vector.load %arg2[%37, %c0_21, %c0_22] : memref<64x1x16xf32, #tpu.memory_space<vmem>>, vector<1x1x16xf32>
    %39 = vector.shape_cast %38 : vector<1x1x16xf32> to vector<1x16xf32>
    %c8_i32_23 = arith.constant 8 : i32
    %40 = arith.muli %arg0, %c8_i32_23 : i32
    %c5_i32 = arith.constant 5 : i32
    %41 = arith.addi %40, %c5_i32 : i32
    %42 = arith.index_cast %41 : i32 to index
    %c0_24 = arith.constant 0 : index
    %43 = memref.load %arg1[%42, %c0_24] : memref<16x4xi32, #tpu.memory_space<smem>>
    %c0_i32_25 = arith.constant 0 : i32
    %44 = arith.addi %c0_i32_25, %43 : i32
    %45 = arith.index_cast %44 : i32 to index
    %c0_26 = arith.constant 0 : index
    %c0_27 = arith.constant 0 : index
    %46 = vector.load %arg2[%45, %c0_26, %c0_27] : memref<64x1x16xf32, #tpu.memory_space<vmem>>, vector<1x1x16xf32>
    %47 = vector.shape_cast %46 : vector<1x1x16xf32> to vector<1x16xf32>
    %c8_i32_28 = arith.constant 8 : i32
    %48 = arith.muli %arg0, %c8_i32_28 : i32
    %c6_i32 = arith.constant 6 : i32
    %49 = arith.addi %48, %c6_i32 : i32
    %50 = arith.index_cast %49 : i32 to index
    %c0_29 = arith.constant 0 : index
    %51 = memref.load %arg1[%50, %c0_29] : memref<16x4xi32, #tpu.memory_space<smem>>
    %c0_i32_30 = arith.constant 0 : i32
    %52 = arith.addi %c0_i32_30, %51 : i32
    %53 = arith.index_cast %52 : i32 to index
    %c0_31 = arith.constant 0 : index
    %c0_32 = arith.constant 0 : index
    %54 = vector.load %arg2[%53, %c0_31, %c0_32] : memref<64x1x16xf32, #tpu.memory_space<vmem>>, vector<1x1x16xf32>
    %55 = vector.shape_cast %54 : vector<1x1x16xf32> to vector<1x16xf32>
    %c8_i32_33 = arith.constant 8 : i32
    %56 = arith.muli %arg0, %c8_i32_33 : i32
    %c7_i32 = arith.constant 7 : i32
    %57 = arith.addi %56, %c7_i32 : i32
    %58 = arith.index_cast %57 : i32 to index
    %c0_34 = arith.constant 0 : index
    %59 = memref.load %arg1[%58, %c0_34] : memref<16x4xi32, #tpu.memory_space<smem>>
    %c0_i32_35 = arith.constant 0 : i32
    %60 = arith.addi %c0_i32_35, %59 : i32
    %61 = arith.index_cast %60 : i32 to index
    %c0_36 = arith.constant 0 : index
    %c0_37 = arith.constant 0 : index
    %62 = vector.load %arg2[%61, %c0_36, %c0_37] : memref<64x1x16xf32, #tpu.memory_space<vmem>>, vector<1x1x16xf32>
    %63 = vector.shape_cast %62 : vector<1x1x16xf32> to vector<1x16xf32>
    %64 = tpu.concatenate %7, %15, %23, %31, %39, %47, %55, %63 in 0 : vector<1x16xf32>, vector<1x16xf32>, vector<1x16xf32>, vector<1x16xf32>, vector<1x16xf32>, vector<1x16xf32>, vector<1x16xf32>, vector<1x16xf32> -> vector<8x16xf32>
    %c8_i32_38 = arith.constant 8 : i32
    %65 = arith.muli %arg0, %c8_i32_38 : i32
    %c0_i32_39 = arith.constant 0 : i32
    %66 = arith.addi %65, %c0_i32_39 : i32
    %67 = arith.index_cast %66 : i32 to index
    %c1 = arith.constant 1 : index
    %68 = memref.load %arg1[%67, %c1] : memref<16x4xi32, #tpu.memory_space<smem>>
    %c0_i32_40 = arith.constant 0 : i32
    %69 = arith.addi %c0_i32_40, %68 : i32
    %70 = arith.index_cast %69 : i32 to index
    %c0_41 = arith.constant 0 : index
    %c0_42 = arith.constant 0 : index
    %71 = vector.load %arg2[%70, %c0_41, %c0_42] : memref<64x1x16xf32, #tpu.memory_space<vmem>>, vector<1x1x16xf32>
    %72 = vector.shape_cast %71 : vector<1x1x16xf32> to vector<1x16xf32>
    %c8_i32_43 = arith.constant 8 : i32
    %73 = arith.muli %arg0, %c8_i32_43 : i32
    %c1_i32_44 = arith.constant 1 : i32
    %74 = arith.addi %73, %c1_i32_44 : i32
    %75 = arith.index_cast %74 : i32 to index
    %c1_45 = arith.constant 1 : index
    %76 = memref.load %arg1[%75, %c1_45] : memref<16x4xi32, #tpu.memory_space<smem>>
    %c0_i32_46 = arith.constant 0 : i32
    %77 = arith.addi %c0_i32_46, %76 : i32
    %78 = arith.index_cast %77 : i32 to index
    %c0_47 = arith.constant 0 : index
    %c0_48 = arith.constant 0 : index
    %79 = vector.load %arg2[%78, %c0_47, %c0_48] : memref<64x1x16xf32, #tpu.memory_space<vmem>>, vector<1x1x16xf32>
    %80 = vector.shape_cast %79 : vector<1x1x16xf32> to vector<1x16xf32>
    %c8_i32_49 = arith.constant 8 : i32
    %81 = arith.muli %arg0, %c8_i32_49 : i32
    %c2_i32_50 = arith.constant 2 : i32
    %82 = arith.addi %81, %c2_i32_50 : i32
    %83 = arith.index_cast %82 : i32 to index
    %c1_51 = arith.constant 1 : index
    %84 = memref.load %arg1[%83, %c1_51] : memref<16x4xi32, #tpu.memory_space<smem>>
    %c0_i32_52 = arith.constant 0 : i32
    %85 = arith.addi %c0_i32_52, %84 : i32
    %86 = arith.index_cast %85 : i32 to index
    %c0_53 = arith.constant 0 : index
    %c0_54 = arith.constant 0 : index
    %87 = vector.load %arg2[%86, %c0_53, %c0_54] : memref<64x1x16xf32, #tpu.memory_space<vmem>>, vector<1x1x16xf32>
    %88 = vector.shape_cast %87 : vector<1x1x16xf32> to vector<1x16xf32>
    %c8_i32_55 = arith.constant 8 : i32
    %89 = arith.muli %arg0, %c8_i32_55 : i32
    %c3_i32_56 = arith.constant 3 : i32
    %90 = arith.addi %89, %c3_i32_56 : i32
    %91 = arith.index_cast %90 : i32 to index
    %c1_57 = arith.constant 1 : index
    %92 = memref.load %arg1[%91, %c1_57] : memref<16x4xi32, #tpu.memory_space<smem>>
    %c0_i32_58 = arith.constant 0 : i32
    %93 = arith.addi %c0_i32_58, %92 : i32
    %94 = arith.index_cast %93 : i32 to index
    %c0_59 = arith.constant 0 : index
    %c0_60 = arith.constant 0 : index
    %95 = vector.load %arg2[%94, %c0_59, %c0_60] : memref<64x1x16xf32, #tpu.memory_space<vmem>>, vector<1x1x16xf32>
    %96 = vector.shape_cast %95 : vector<1x1x16xf32> to vector<1x16xf32>
    %c8_i32_61 = arith.constant 8 : i32
    %97 = arith.muli %arg0, %c8_i32_61 : i32
    %c4_i32_62 = arith.constant 4 : i32
    %98 = arith.addi %97, %c4_i32_62 : i32
    %99 = arith.index_cast %98 : i32 to index
    %c1_63 = arith.constant 1 : index
    %100 = memref.load %arg1[%99, %c1_63] : memref<16x4xi32, #tpu.memory_space<smem>>
    %c0_i32_64 = arith.constant 0 : i32
    %101 = arith.addi %c0_i32_64, %100 : i32
    %102 = arith.index_cast %101 : i32 to index
    %c0_65 = arith.constant 0 : index
    %c0_66 = arith.constant 0 : index
    %103 = vector.load %arg2[%102, %c0_65, %c0_66] : memref<64x1x16xf32, #tpu.memory_space<vmem>>, vector<1x1x16xf32>
    %104 = vector.shape_cast %103 : vector<1x1x16xf32> to vector<1x16xf32>
    %c8_i32_67 = arith.constant 8 : i32
    %105 = arith.muli %arg0, %c8_i32_67 : i32
    %c5_i32_68 = arith.constant 5 : i32
    %106 = arith.addi %105, %c5_i32_68 : i32
    %107 = arith.index_cast %106 : i32 to index
    %c1_69 = arith.constant 1 : index
    %108 = memref.load %arg1[%107, %c1_69] : memref<16x4xi32, #tpu.memory_space<smem>>
    %c0_i32_70 = arith.constant 0 : i32
    %109 = arith.addi %c0_i32_70, %108 : i32
    %110 = arith.index_cast %109 : i32 to index
    %c0_71 = arith.constant 0 : index
    %c0_72 = arith.constant 0 : index
    %111 = vector.load %arg2[%110, %c0_71, %c0_72] : memref<64x1x16xf32, #tpu.memory_space<vmem>>, vector<1x1x16xf32>
    %112 = vector.shape_cast %111 : vector<1x1x16xf32> to vector<1x16xf32>
    %c8_i32_73 = arith.constant 8 : i32
    %113 = arith.muli %arg0, %c8_i32_73 : i32
    %c6_i32_74 = arith.constant 6 : i32
    %114 = arith.addi %113, %c6_i32_74 : i32
    %115 = arith.index_cast %114 : i32 to index
    %c1_75 = arith.constant 1 : index
    %116 = memref.load %arg1[%115, %c1_75] : memref<16x4xi32, #tpu.memory_space<smem>>
    %c0_i32_76 = arith.constant 0 : i32
    %117 = arith.addi %c0_i32_76, %116 : i32
    %118 = arith.index_cast %117 : i32 to index
    %c0_77 = arith.constant 0 : index
    %c0_78 = arith.constant 0 : index
    %119 = vector.load %arg2[%118, %c0_77, %c0_78] : memref<64x1x16xf32, #tpu.memory_space<vmem>>, vector<1x1x16xf32>
    %120 = vector.shape_cast %119 : vector<1x1x16xf32> to vector<1x16xf32>
    %c8_i32_79 = arith.constant 8 : i32
    %121 = arith.muli %arg0, %c8_i32_79 : i32
    %c7_i32_80 = arith.constant 7 : i32
    %122 = arith.addi %121, %c7_i32_80 : i32
    %123 = arith.index_cast %122 : i32 to index
    %c1_81 = arith.constant 1 : index
    %124 = memref.load %arg1[%123, %c1_81] : memref<16x4xi32, #tpu.memory_space<smem>>
    %c0_i32_82 = arith.constant 0 : i32
    %125 = arith.addi %c0_i32_82, %124 : i32
    %126 = arith.index_cast %125 : i32 to index
    %c0_83 = arith.constant 0 : index
    %c0_84 = arith.constant 0 : index
    %127 = vector.load %arg2[%126, %c0_83, %c0_84] : memref<64x1x16xf32, #tpu.memory_space<vmem>>, vector<1x1x16xf32>
    %128 = vector.shape_cast %127 : vector<1x1x16xf32> to vector<1x16xf32>
    %129 = tpu.concatenate %72, %80, %88, %96, %104, %112, %120, %128 in 0 : vector<1x16xf32>, vector<1x16xf32>, vector<1x16xf32>, vector<1x16xf32>, vector<1x16xf32>, vector<1x16xf32>, vector<1x16xf32>, vector<1x16xf32> -> vector<8x16xf32>
    %c8_i32_85 = arith.constant 8 : i32
    %130 = arith.muli %arg0, %c8_i32_85 : i32
    %c0_i32_86 = arith.constant 0 : i32
    %131 = arith.addi %130, %c0_i32_86 : i32
    %132 = arith.index_cast %131 : i32 to index
    %c0_87 = arith.constant 0 : index
    %133 = memref.load %arg1[%132, %c0_87] : memref<16x4xi32, #tpu.memory_space<smem>>
    %c32_i32 = arith.constant 32 : i32
    %134 = arith.addi %c32_i32, %133 : i32
    %135 = arith.index_cast %134 : i32 to index
    %c0_88 = arith.constant 0 : index
    %c0_89 = arith.constant 0 : index
    %136 = vector.load %arg2[%135, %c0_88, %c0_89] : memref<64x1x16xf32, #tpu.memory_space<vmem>>, vector<1x1x16xf32>
    %137 = vector.shape_cast %136 : vector<1x1x16xf32> to vector<1x16xf32>
    %c8_i32_90 = arith.constant 8 : i32
    %138 = arith.muli %arg0, %c8_i32_90 : i32
    %c1_i32_91 = arith.constant 1 : i32
    %139 = arith.addi %138, %c1_i32_91 : i32
    %140 = arith.index_cast %139 : i32 to index
    %c0_92 = arith.constant 0 : index
    %141 = memref.load %arg1[%140, %c0_92] : memref<16x4xi32, #tpu.memory_space<smem>>
    %c32_i32_93 = arith.constant 32 : i32
    %142 = arith.addi %c32_i32_93, %141 : i32
    %143 = arith.index_cast %142 : i32 to index
    %c0_94 = arith.constant 0 : index
    %c0_95 = arith.constant 0 : index
    %144 = vector.load %arg2[%143, %c0_94, %c0_95] : memref<64x1x16xf32, #tpu.memory_space<vmem>>, vector<1x1x16xf32>
    %145 = vector.shape_cast %144 : vector<1x1x16xf32> to vector<1x16xf32>
    %c8_i32_96 = arith.constant 8 : i32
    %146 = arith.muli %arg0, %c8_i32_96 : i32
    %c2_i32_97 = arith.constant 2 : i32
    %147 = arith.addi %146, %c2_i32_97 : i32
    %148 = arith.index_cast %147 : i32 to index
    %c0_98 = arith.constant 0 : index
    %149 = memref.load %arg1[%148, %c0_98] : memref<16x4xi32, #tpu.memory_space<smem>>
    %c32_i32_99 = arith.constant 32 : i32
    %150 = arith.addi %c32_i32_99, %149 : i32
    %151 = arith.index_cast %150 : i32 to index
    %c0_100 = arith.constant 0 : index
    %c0_101 = arith.constant 0 : index
    %152 = vector.load %arg2[%151, %c0_100, %c0_101] : memref<64x1x16xf32, #tpu.memory_space<vmem>>, vector<1x1x16xf32>
    %153 = vector.shape_cast %152 : vector<1x1x16xf32> to vector<1x16xf32>
    %c8_i32_102 = arith.constant 8 : i32
    %154 = arith.muli %arg0, %c8_i32_102 : i32
    %c3_i32_103 = arith.constant 3 : i32
    %155 = arith.addi %154, %c3_i32_103 : i32
    %156 = arith.index_cast %155 : i32 to index
    %c0_104 = arith.constant 0 : index
    %157 = memref.load %arg1[%156, %c0_104] : memref<16x4xi32, #tpu.memory_space<smem>>
    %c32_i32_105 = arith.constant 32 : i32
    %158 = arith.addi %c32_i32_105, %157 : i32
    %159 = arith.index_cast %158 : i32 to index
    %c0_106 = arith.constant 0 : index
    %c0_107 = arith.constant 0 : index
    %160 = vector.load %arg2[%159, %c0_106, %c0_107] : memref<64x1x16xf32, #tpu.memory_space<vmem>>, vector<1x1x16xf32>
    %161 = vector.shape_cast %160 : vector<1x1x16xf32> to vector<1x16xf32>
    %c8_i32_108 = arith.constant 8 : i32
    %162 = arith.muli %arg0, %c8_i32_108 : i32
    %c4_i32_109 = arith.constant 4 : i32
    %163 = arith.addi %162, %c4_i32_109 : i32
    %164 = arith.index_cast %163 : i32 to index
    %c0_110 = arith.constant 0 : index
    %165 = memref.load %arg1[%164, %c0_110] : memref<16x4xi32, #tpu.memory_space<smem>>
    %c32_i32_111 = arith.constant 32 : i32
    %166 = arith.addi %c32_i32_111, %165 : i32
    %167 = arith.index_cast %166 : i32 to index
    %c0_112 = arith.constant 0 : index
    %c0_113 = arith.constant 0 : index
    %168 = vector.load %arg2[%167, %c0_112, %c0_113] : memref<64x1x16xf32, #tpu.memory_space<vmem>>, vector<1x1x16xf32>
    %169 = vector.shape_cast %168 : vector<1x1x16xf32> to vector<1x16xf32>
    %c8_i32_114 = arith.constant 8 : i32
    %170 = arith.muli %arg0, %c8_i32_114 : i32
    %c5_i32_115 = arith.constant 5 : i32
    %171 = arith.addi %170, %c5_i32_115 : i32
    %172 = arith.index_cast %171 : i32 to index
    %c0_116 = arith.constant 0 : index
    %173 = memref.load %arg1[%172, %c0_116] : memref<16x4xi32, #tpu.memory_space<smem>>
    %c32_i32_117 = arith.constant 32 : i32
    %174 = arith.addi %c32_i32_117, %173 : i32
    %175 = arith.index_cast %174 : i32 to index
    %c0_118 = arith.constant 0 : index
    %c0_119 = arith.constant 0 : index
    %176 = vector.load %arg2[%175, %c0_118, %c0_119] : memref<64x1x16xf32, #tpu.memory_space<vmem>>, vector<1x1x16xf32>
    %177 = vector.shape_cast %176 : vector<1x1x16xf32> to vector<1x16xf32>
    %c8_i32_120 = arith.constant 8 : i32
    %178 = arith.muli %arg0, %c8_i32_120 : i32
    %c6_i32_121 = arith.constant 6 : i32
    %179 = arith.addi %178, %c6_i32_121 : i32
    %180 = arith.index_cast %179 : i32 to index
    %c0_122 = arith.constant 0 : index
    %181 = memref.load %arg1[%180, %c0_122] : memref<16x4xi32, #tpu.memory_space<smem>>
    %c32_i32_123 = arith.constant 32 : i32
    %182 = arith.addi %c32_i32_123, %181 : i32
    %183 = arith.index_cast %182 : i32 to index
    %c0_124 = arith.constant 0 : index
    %c0_125 = arith.constant 0 : index
    %184 = vector.load %arg2[%183, %c0_124, %c0_125] : memref<64x1x16xf32, #tpu.memory_space<vmem>>, vector<1x1x16xf32>
    %185 = vector.shape_cast %184 : vector<1x1x16xf32> to vector<1x16xf32>
    %c8_i32_126 = arith.constant 8 : i32
    %186 = arith.muli %arg0, %c8_i32_126 : i32
    %c7_i32_127 = arith.constant 7 : i32
    %187 = arith.addi %186, %c7_i32_127 : i32
    %188 = arith.index_cast %187 : i32 to index
    %c0_128 = arith.constant 0 : index
    %189 = memref.load %arg1[%188, %c0_128] : memref<16x4xi32, #tpu.memory_space<smem>>
    %c32_i32_129 = arith.constant 32 : i32
    %190 = arith.addi %c32_i32_129, %189 : i32
    %191 = arith.index_cast %190 : i32 to index
    %c0_130 = arith.constant 0 : index
    %c0_131 = arith.constant 0 : index
    %192 = vector.load %arg2[%191, %c0_130, %c0_131] : memref<64x1x16xf32, #tpu.memory_space<vmem>>, vector<1x1x16xf32>
    %193 = vector.shape_cast %192 : vector<1x1x16xf32> to vector<1x16xf32>
    %194 = tpu.concatenate %137, %145, %153, %161, %169, %177, %185, %193 in 0 : vector<1x16xf32>, vector<1x16xf32>, vector<1x16xf32>, vector<1x16xf32>, vector<1x16xf32>, vector<1x16xf32>, vector<1x16xf32>, vector<1x16xf32> -> vector<8x16xf32>
    %c8_i32_132 = arith.constant 8 : i32
    %195 = arith.muli %arg0, %c8_i32_132 : i32
    %c0_i32_133 = arith.constant 0 : i32
    %196 = arith.addi %195, %c0_i32_133 : i32
    %197 = arith.index_cast %196 : i32 to index
    %c2 = arith.constant 2 : index
    %198 = memref.load %arg1[%197, %c2] : memref<16x4xi32, #tpu.memory_space<smem>>
    %c0_i32_134 = arith.constant 0 : i32
    %199 = arith.addi %c0_i32_134, %198 : i32
    %200 = arith.index_cast %199 : i32 to index
    %c0_135 = arith.constant 0 : index
    %c0_136 = arith.constant 0 : index
    %201 = vector.load %arg2[%200, %c0_135, %c0_136] : memref<64x1x16xf32, #tpu.memory_space<vmem>>, vector<1x1x16xf32>
    %202 = vector.shape_cast %201 : vector<1x1x16xf32> to vector<1x16xf32>
    %c8_i32_137 = arith.constant 8 : i32
    %203 = arith.muli %arg0, %c8_i32_137 : i32
    %c1_i32_138 = arith.constant 1 : i32
    %204 = arith.addi %203, %c1_i32_138 : i32
    %205 = arith.index_cast %204 : i32 to index
    %c2_139 = arith.constant 2 : index
    %206 = memref.load %arg1[%205, %c2_139] : memref<16x4xi32, #tpu.memory_space<smem>>
    %c0_i32_140 = arith.constant 0 : i32
    %207 = arith.addi %c0_i32_140, %206 : i32
    %208 = arith.index_cast %207 : i32 to index
    %c0_141 = arith.constant 0 : index
    %c0_142 = arith.constant 0 : index
    %209 = vector.load %arg2[%208, %c0_141, %c0_142] : memref<64x1x16xf32, #tpu.memory_space<vmem>>, vector<1x1x16xf32>
    %210 = vector.shape_cast %209 : vector<1x1x16xf32> to vector<1x16xf32>
    %c8_i32_143 = arith.constant 8 : i32
    %211 = arith.muli %arg0, %c8_i32_143 : i32
    %c2_i32_144 = arith.constant 2 : i32
    %212 = arith.addi %211, %c2_i32_144 : i32
    %213 = arith.index_cast %212 : i32 to index
    %c2_145 = arith.constant 2 : index
    %214 = memref.load %arg1[%213, %c2_145] : memref<16x4xi32, #tpu.memory_space<smem>>
    %c0_i32_146 = arith.constant 0 : i32
    %215 = arith.addi %c0_i32_146, %214 : i32
    %216 = arith.index_cast %215 : i32 to index
    %c0_147 = arith.constant 0 : index
    %c0_148 = arith.constant 0 : index
    %217 = vector.load %arg2[%216, %c0_147, %c0_148] : memref<64x1x16xf32, #tpu.memory_space<vmem>>, vector<1x1x16xf32>
    %218 = vector.shape_cast %217 : vector<1x1x16xf32> to vector<1x16xf32>
    %c8_i32_149 = arith.constant 8 : i32
    %219 = arith.muli %arg0, %c8_i32_149 : i32
    %c3_i32_150 = arith.constant 3 : i32
    %220 = arith.addi %219, %c3_i32_150 : i32
    %221 = arith.index_cast %220 : i32 to index
    %c2_151 = arith.constant 2 : index
    %222 = memref.load %arg1[%221, %c2_151] : memref<16x4xi32, #tpu.memory_space<smem>>
    %c0_i32_152 = arith.constant 0 : i32
    %223 = arith.addi %c0_i32_152, %222 : i32
    %224 = arith.index_cast %223 : i32 to index
    %c0_153 = arith.constant 0 : index
    %c0_154 = arith.constant 0 : index
    %225 = vector.load %arg2[%224, %c0_153, %c0_154] : memref<64x1x16xf32, #tpu.memory_space<vmem>>, vector<1x1x16xf32>
    %226 = vector.shape_cast %225 : vector<1x1x16xf32> to vector<1x16xf32>
    %c8_i32_155 = arith.constant 8 : i32
    %227 = arith.muli %arg0, %c8_i32_155 : i32
    %c4_i32_156 = arith.constant 4 : i32
    %228 = arith.addi %227, %c4_i32_156 : i32
    %229 = arith.index_cast %228 : i32 to index
    %c2_157 = arith.constant 2 : index
    %230 = memref.load %arg1[%229, %c2_157] : memref<16x4xi32, #tpu.memory_space<smem>>
    %c0_i32_158 = arith.constant 0 : i32
    %231 = arith.addi %c0_i32_158, %230 : i32
    %232 = arith.index_cast %231 : i32 to index
    %c0_159 = arith.constant 0 : index
    %c0_160 = arith.constant 0 : index
    %233 = vector.load %arg2[%232, %c0_159, %c0_160] : memref<64x1x16xf32, #tpu.memory_space<vmem>>, vector<1x1x16xf32>
    %234 = vector.shape_cast %233 : vector<1x1x16xf32> to vector<1x16xf32>
    %c8_i32_161 = arith.constant 8 : i32
    %235 = arith.muli %arg0, %c8_i32_161 : i32
    %c5_i32_162 = arith.constant 5 : i32
    %236 = arith.addi %235, %c5_i32_162 : i32
    %237 = arith.index_cast %236 : i32 to index
    %c2_163 = arith.constant 2 : index
    %238 = memref.load %arg1[%237, %c2_163] : memref<16x4xi32, #tpu.memory_space<smem>>
    %c0_i32_164 = arith.constant 0 : i32
    %239 = arith.addi %c0_i32_164, %238 : i32
    %240 = arith.index_cast %239 : i32 to index
    %c0_165 = arith.constant 0 : index
    %c0_166 = arith.constant 0 : index
    %241 = vector.load %arg2[%240, %c0_165, %c0_166] : memref<64x1x16xf32, #tpu.memory_space<vmem>>, vector<1x1x16xf32>
    %242 = vector.shape_cast %241 : vector<1x1x16xf32> to vector<1x16xf32>
    %c8_i32_167 = arith.constant 8 : i32
    %243 = arith.muli %arg0, %c8_i32_167 : i32
    %c6_i32_168 = arith.constant 6 : i32
    %244 = arith.addi %243, %c6_i32_168 : i32
    %245 = arith.index_cast %244 : i32 to index
    %c2_169 = arith.constant 2 : index
    %246 = memref.load %arg1[%245, %c2_169] : memref<16x4xi32, #tpu.memory_space<smem>>
    %c0_i32_170 = arith.constant 0 : i32
    %247 = arith.addi %c0_i32_170, %246 : i32
    %248 = arith.index_cast %247 : i32 to index
    %c0_171 = arith.constant 0 : index
    %c0_172 = arith.constant 0 : index
    %249 = vector.load %arg2[%248, %c0_171, %c0_172] : memref<64x1x16xf32, #tpu.memory_space<vmem>>, vector<1x1x16xf32>
    %250 = vector.shape_cast %249 : vector<1x1x16xf32> to vector<1x16xf32>
    %c8_i32_173 = arith.constant 8 : i32
    %251 = arith.muli %arg0, %c8_i32_173 : i32
    %c7_i32_174 = arith.constant 7 : i32
    %252 = arith.addi %251, %c7_i32_174 : i32
    %253 = arith.index_cast %252 : i32 to index
    %c2_175 = arith.constant 2 : index
    %254 = memref.load %arg1[%253, %c2_175] : memref<16x4xi32, #tpu.memory_space<smem>>
    %c0_i32_176 = arith.constant 0 : i32
    %255 = arith.addi %c0_i32_176, %254 : i32
    %256 = arith.index_cast %255 : i32 to index
    %c0_177 = arith.constant 0 : index
    %c0_178 = arith.constant 0 : index
    %257 = vector.load %arg2[%256, %c0_177, %c0_178] : memref<64x1x16xf32, #tpu.memory_space<vmem>>, vector<1x1x16xf32>
    %258 = vector.shape_cast %257 : vector<1x1x16xf32> to vector<1x16xf32>
    %259 = tpu.concatenate %202, %210, %218, %226, %234, %242, %250, %258 in 0 : vector<1x16xf32>, vector<1x16xf32>, vector<1x16xf32>, vector<1x16xf32>, vector<1x16xf32>, vector<1x16xf32>, vector<1x16xf32>, vector<1x16xf32> -> vector<8x16xf32>
    %c8_i32_179 = arith.constant 8 : i32
    %260 = arith.muli %arg0, %c8_i32_179 : i32
    %c0_i32_180 = arith.constant 0 : i32
    %261 = arith.addi %260, %c0_i32_180 : i32
    %262 = arith.index_cast %261 : i32 to index
    %c3 = arith.constant 3 : index
    %263 = memref.load %arg1[%262, %c3] : memref<16x4xi32, #tpu.memory_space<smem>>
    %c0_i32_181 = arith.constant 0 : i32
    %264 = arith.addi %c0_i32_181, %263 : i32
    %265 = arith.index_cast %264 : i32 to index
    %c0_182 = arith.constant 0 : index
    %c0_183 = arith.constant 0 : index
    %266 = vector.load %arg2[%265, %c0_182, %c0_183] : memref<64x1x16xf32, #tpu.memory_space<vmem>>, vector<1x1x16xf32>
    %267 = vector.shape_cast %266 : vector<1x1x16xf32> to vector<1x16xf32>
    %c8_i32_184 = arith.constant 8 : i32
    %268 = arith.muli %arg0, %c8_i32_184 : i32
    %c1_i32_185 = arith.constant 1 : i32
    %269 = arith.addi %268, %c1_i32_185 : i32
    %270 = arith.index_cast %269 : i32 to index
    %c3_186 = arith.constant 3 : index
    %271 = memref.load %arg1[%270, %c3_186] : memref<16x4xi32, #tpu.memory_space<smem>>
    %c0_i32_187 = arith.constant 0 : i32
    %272 = arith.addi %c0_i32_187, %271 : i32
    %273 = arith.index_cast %272 : i32 to index
    %c0_188 = arith.constant 0 : index
    %c0_189 = arith.constant 0 : index
    %274 = vector.load %arg2[%273, %c0_188, %c0_189] : memref<64x1x16xf32, #tpu.memory_space<vmem>>, vector<1x1x16xf32>
    %275 = vector.shape_cast %274 : vector<1x1x16xf32> to vector<1x16xf32>
    %c8_i32_190 = arith.constant 8 : i32
    %276 = arith.muli %arg0, %c8_i32_190 : i32
    %c2_i32_191 = arith.constant 2 : i32
    %277 = arith.addi %276, %c2_i32_191 : i32
    %278 = arith.index_cast %277 : i32 to index
    %c3_192 = arith.constant 3 : index
    %279 = memref.load %arg1[%278, %c3_192] : memref<16x4xi32, #tpu.memory_space<smem>>
    %c0_i32_193 = arith.constant 0 : i32
    %280 = arith.addi %c0_i32_193, %279 : i32
    %281 = arith.index_cast %280 : i32 to index
    %c0_194 = arith.constant 0 : index
    %c0_195 = arith.constant 0 : index
    %282 = vector.load %arg2[%281, %c0_194, %c0_195] : memref<64x1x16xf32, #tpu.memory_space<vmem>>, vector<1x1x16xf32>
    %283 = vector.shape_cast %282 : vector<1x1x16xf32> to vector<1x16xf32>
    %c8_i32_196 = arith.constant 8 : i32
    %284 = arith.muli %arg0, %c8_i32_196 : i32
    %c3_i32_197 = arith.constant 3 : i32
    %285 = arith.addi %284, %c3_i32_197 : i32
    %286 = arith.index_cast %285 : i32 to index
    %c3_198 = arith.constant 3 : index
    %287 = memref.load %arg1[%286, %c3_198] : memref<16x4xi32, #tpu.memory_space<smem>>
    %c0_i32_199 = arith.constant 0 : i32
    %288 = arith.addi %c0_i32_199, %287 : i32
    %289 = arith.index_cast %288 : i32 to index
    %c0_200 = arith.constant 0 : index
    %c0_201 = arith.constant 0 : index
    %290 = vector.load %arg2[%289, %c0_200, %c0_201] : memref<64x1x16xf32, #tpu.memory_space<vmem>>, vector<1x1x16xf32>
    %291 = vector.shape_cast %290 : vector<1x1x16xf32> to vector<1x16xf32>
    %c8_i32_202 = arith.constant 8 : i32
    %292 = arith.muli %arg0, %c8_i32_202 : i32
    %c4_i32_203 = arith.constant 4 : i32
    %293 = arith.addi %292, %c4_i32_203 : i32
    %294 = arith.index_cast %293 : i32 to index
    %c3_204 = arith.constant 3 : index
    %295 = memref.load %arg1[%294, %c3_204] : memref<16x4xi32, #tpu.memory_space<smem>>
    %c0_i32_205 = arith.constant 0 : i32
    %296 = arith.addi %c0_i32_205, %295 : i32
    %297 = arith.index_cast %296 : i32 to index
    %c0_206 = arith.constant 0 : index
    %c0_207 = arith.constant 0 : index
    %298 = vector.load %arg2[%297, %c0_206, %c0_207] : memref<64x1x16xf32, #tpu.memory_space<vmem>>, vector<1x1x16xf32>
    %299 = vector.shape_cast %298 : vector<1x1x16xf32> to vector<1x16xf32>
    %c8_i32_208 = arith.constant 8 : i32
    %300 = arith.muli %arg0, %c8_i32_208 : i32
    %c5_i32_209 = arith.constant 5 : i32
    %301 = arith.addi %300, %c5_i32_209 : i32
    %302 = arith.index_cast %301 : i32 to index
    %c3_210 = arith.constant 3 : index
    %303 = memref.load %arg1[%302, %c3_210] : memref<16x4xi32, #tpu.memory_space<smem>>
    %c0_i32_211 = arith.constant 0 : i32
    %304 = arith.addi %c0_i32_211, %303 : i32
    %305 = arith.index_cast %304 : i32 to index
    %c0_212 = arith.constant 0 : index
    %c0_213 = arith.constant 0 : index
    %306 = vector.load %arg2[%305, %c0_212, %c0_213] : memref<64x1x16xf32, #tpu.memory_space<vmem>>, vector<1x1x16xf32>
    %307 = vector.shape_cast %306 : vector<1x1x16xf32> to vector<1x16xf32>
    %c8_i32_214 = arith.constant 8 : i32
    %308 = arith.muli %arg0, %c8_i32_214 : i32
    %c6_i32_215 = arith.constant 6 : i32
    %309 = arith.addi %308, %c6_i32_215 : i32
    %310 = arith.index_cast %309 : i32 to index
    %c3_216 = arith.constant 3 : index
    %311 = memref.load %arg1[%310, %c3_216] : memref<16x4xi32, #tpu.memory_space<smem>>
    %c0_i32_217 = arith.constant 0 : i32
    %312 = arith.addi %c0_i32_217, %311 : i32
    %313 = arith.index_cast %312 : i32 to index
    %c0_218 = arith.constant 0 : index
    %c0_219 = arith.constant 0 : index
    %314 = vector.load %arg2[%313, %c0_218, %c0_219] : memref<64x1x16xf32, #tpu.memory_space<vmem>>, vector<1x1x16xf32>
    %315 = vector.shape_cast %314 : vector<1x1x16xf32> to vector<1x16xf32>
    %c8_i32_220 = arith.constant 8 : i32
    %316 = arith.muli %arg0, %c8_i32_220 : i32
    %c7_i32_221 = arith.constant 7 : i32
    %317 = arith.addi %316, %c7_i32_221 : i32
    %318 = arith.index_cast %317 : i32 to index
    %c3_222 = arith.constant 3 : index
    %319 = memref.load %arg1[%318, %c3_222] : memref<16x4xi32, #tpu.memory_space<smem>>
    %c0_i32_223 = arith.constant 0 : i32
    %320 = arith.addi %c0_i32_223, %319 : i32
    %321 = arith.index_cast %320 : i32 to index
    %c0_224 = arith.constant 0 : index
    %c0_225 = arith.constant 0 : index
    %322 = vector.load %arg2[%321, %c0_224, %c0_225] : memref<64x1x16xf32, #tpu.memory_space<vmem>>, vector<1x1x16xf32>
    %323 = vector.shape_cast %322 : vector<1x1x16xf32> to vector<1x16xf32>
    %324 = tpu.concatenate %267, %275, %283, %291, %299, %307, %315, %323 in 0 : vector<1x16xf32>, vector<1x16xf32>, vector<1x16xf32>, vector<1x16xf32>, vector<1x16xf32>, vector<1x16xf32>, vector<1x16xf32>, vector<1x16xf32> -> vector<8x16xf32>
    %c8_i32_226 = arith.constant 8 : i32
    %325 = arith.muli %arg0, %c8_i32_226 : i32
    %c0_i32_227 = arith.constant 0 : i32
    %326 = arith.addi %325, %c0_i32_227 : i32
    %327 = arith.index_cast %326 : i32 to index
    %c1_228 = arith.constant 1 : index
    %328 = memref.load %arg1[%327, %c1_228] : memref<16x4xi32, #tpu.memory_space<smem>>
    %c32_i32_229 = arith.constant 32 : i32
    %329 = arith.addi %c32_i32_229, %328 : i32
    %330 = arith.index_cast %329 : i32 to index
    %c0_230 = arith.constant 0 : index
    %c0_231 = arith.constant 0 : index
    %331 = vector.load %arg2[%330, %c0_230, %c0_231] : memref<64x1x16xf32, #tpu.memory_space<vmem>>, vector<1x1x16xf32>
    %332 = vector.shape_cast %331 : vector<1x1x16xf32> to vector<1x16xf32>
    %c8_i32_232 = arith.constant 8 : i32
    %333 = arith.muli %arg0, %c8_i32_232 : i32
    %c1_i32_233 = arith.constant 1 : i32
    %334 = arith.addi %333, %c1_i32_233 : i32
    %335 = arith.index_cast %334 : i32 to index
    %c1_234 = arith.constant 1 : index
    %336 = memref.load %arg1[%335, %c1_234] : memref<16x4xi32, #tpu.memory_space<smem>>
    %c32_i32_235 = arith.constant 32 : i32
    %337 = arith.addi %c32_i32_235, %336 : i32
    %338 = arith.index_cast %337 : i32 to index
    %c0_236 = arith.constant 0 : index
    %c0_237 = arith.constant 0 : index
    %339 = vector.load %arg2[%338, %c0_236, %c0_237] : memref<64x1x16xf32, #tpu.memory_space<vmem>>, vector<1x1x16xf32>
    %340 = vector.shape_cast %339 : vector<1x1x16xf32> to vector<1x16xf32>
    %c8_i32_238 = arith.constant 8 : i32
    %341 = arith.muli %arg0, %c8_i32_238 : i32
    %c2_i32_239 = arith.constant 2 : i32
    %342 = arith.addi %341, %c2_i32_239 : i32
    %343 = arith.index_cast %342 : i32 to index
    %c1_240 = arith.constant 1 : index
    %344 = memref.load %arg1[%343, %c1_240] : memref<16x4xi32, #tpu.memory_space<smem>>
    %c32_i32_241 = arith.constant 32 : i32
    %345 = arith.addi %c32_i32_241, %344 : i32
    %346 = arith.index_cast %345 : i32 to index
    %c0_242 = arith.constant 0 : index
    %c0_243 = arith.constant 0 : index
    %347 = vector.load %arg2[%346, %c0_242, %c0_243] : memref<64x1x16xf32, #tpu.memory_space<vmem>>, vector<1x1x16xf32>
    %348 = vector.shape_cast %347 : vector<1x1x16xf32> to vector<1x16xf32>
    %c8_i32_244 = arith.constant 8 : i32
    %349 = arith.muli %arg0, %c8_i32_244 : i32
    %c3_i32_245 = arith.constant 3 : i32
    %350 = arith.addi %349, %c3_i32_245 : i32
    %351 = arith.index_cast %350 : i32 to index
    %c1_246 = arith.constant 1 : index
    %352 = memref.load %arg1[%351, %c1_246] : memref<16x4xi32, #tpu.memory_space<smem>>
    %c32_i32_247 = arith.constant 32 : i32
    %353 = arith.addi %c32_i32_247, %352 : i32
    %354 = arith.index_cast %353 : i32 to index
    %c0_248 = arith.constant 0 : index
    %c0_249 = arith.constant 0 : index
    %355 = vector.load %arg2[%354, %c0_248, %c0_249] : memref<64x1x16xf32, #tpu.memory_space<vmem>>, vector<1x1x16xf32>
    %356 = vector.shape_cast %355 : vector<1x1x16xf32> to vector<1x16xf32>
    %c8_i32_250 = arith.constant 8 : i32
    %357 = arith.muli %arg0, %c8_i32_250 : i32
    %c4_i32_251 = arith.constant 4 : i32
    %358 = arith.addi %357, %c4_i32_251 : i32
    %359 = arith.index_cast %358 : i32 to index
    %c1_252 = arith.constant 1 : index
    %360 = memref.load %arg1[%359, %c1_252] : memref<16x4xi32, #tpu.memory_space<smem>>
    %c32_i32_253 = arith.constant 32 : i32
    %361 = arith.addi %c32_i32_253, %360 : i32
    %362 = arith.index_cast %361 : i32 to index
    %c0_254 = arith.constant 0 : index
    %c0_255 = arith.constant 0 : index
    %363 = vector.load %arg2[%362, %c0_254, %c0_255] : memref<64x1x16xf32, #tpu.memory_space<vmem>>, vector<1x1x16xf32>
    %364 = vector.shape_cast %363 : vector<1x1x16xf32> to vector<1x16xf32>
    %c8_i32_256 = arith.constant 8 : i32
    %365 = arith.muli %arg0, %c8_i32_256 : i32
    %c5_i32_257 = arith.constant 5 : i32
    %366 = arith.addi %365, %c5_i32_257 : i32
    %367 = arith.index_cast %366 : i32 to index
    %c1_258 = arith.constant 1 : index
    %368 = memref.load %arg1[%367, %c1_258] : memref<16x4xi32, #tpu.memory_space<smem>>
    %c32_i32_259 = arith.constant 32 : i32
    %369 = arith.addi %c32_i32_259, %368 : i32
    %370 = arith.index_cast %369 : i32 to index
    %c0_260 = arith.constant 0 : index
    %c0_261 = arith.constant 0 : index
    %371 = vector.load %arg2[%370, %c0_260, %c0_261] : memref<64x1x16xf32, #tpu.memory_space<vmem>>, vector<1x1x16xf32>
    %372 = vector.shape_cast %371 : vector<1x1x16xf32> to vector<1x16xf32>
    %c8_i32_262 = arith.constant 8 : i32
    %373 = arith.muli %arg0, %c8_i32_262 : i32
    %c6_i32_263 = arith.constant 6 : i32
    %374 = arith.addi %373, %c6_i32_263 : i32
    %375 = arith.index_cast %374 : i32 to index
    %c1_264 = arith.constant 1 : index
    %376 = memref.load %arg1[%375, %c1_264] : memref<16x4xi32, #tpu.memory_space<smem>>
    %c32_i32_265 = arith.constant 32 : i32
    %377 = arith.addi %c32_i32_265, %376 : i32
    %378 = arith.index_cast %377 : i32 to index
    %c0_266 = arith.constant 0 : index
    %c0_267 = arith.constant 0 : index
    %379 = vector.load %arg2[%378, %c0_266, %c0_267] : memref<64x1x16xf32, #tpu.memory_space<vmem>>, vector<1x1x16xf32>
    %380 = vector.shape_cast %379 : vector<1x1x16xf32> to vector<1x16xf32>
    %c8_i32_268 = arith.constant 8 : i32
    %381 = arith.muli %arg0, %c8_i32_268 : i32
    %c7_i32_269 = arith.constant 7 : i32
    %382 = arith.addi %381, %c7_i32_269 : i32
    %383 = arith.index_cast %382 : i32 to index
    %c1_270 = arith.constant 1 : index
    %384 = memref.load %arg1[%383, %c1_270] : memref<16x4xi32, #tpu.memory_space<smem>>
    %c32_i32_271 = arith.constant 32 : i32
    %385 = arith.addi %c32_i32_271, %384 : i32
    %386 = arith.index_cast %385 : i32 to index
    %c0_272 = arith.constant 0 : index
    %c0_273 = arith.constant 0 : index
    %387 = vector.load %arg2[%386, %c0_272, %c0_273] : memref<64x1x16xf32, #tpu.memory_space<vmem>>, vector<1x1x16xf32>
    %388 = vector.shape_cast %387 : vector<1x1x16xf32> to vector<1x16xf32>
    %389 = tpu.concatenate %332, %340, %348, %356, %364, %372, %380, %388 in 0 : vector<1x16xf32>, vector<1x16xf32>, vector<1x16xf32>, vector<1x16xf32>, vector<1x16xf32>, vector<1x16xf32>, vector<1x16xf32>, vector<1x16xf32> -> vector<8x16xf32>
    %c8_i32_274 = arith.constant 8 : i32
    %390 = arith.muli %arg0, %c8_i32_274 : i32
    %c0_i32_275 = arith.constant 0 : i32
    %391 = arith.addi %390, %c0_i32_275 : i32
    %392 = arith.index_cast %391 : i32 to index
    %c2_276 = arith.constant 2 : index
    %393 = memref.load %arg1[%392, %c2_276] : memref<16x4xi32, #tpu.memory_space<smem>>
    %c32_i32_277 = arith.constant 32 : i32
    %394 = arith.addi %c32_i32_277, %393 : i32
    %395 = arith.index_cast %394 : i32 to index
    %c0_278 = arith.constant 0 : index
    %c0_279 = arith.constant 0 : index
    %396 = vector.load %arg2[%395, %c0_278, %c0_279] : memref<64x1x16xf32, #tpu.memory_space<vmem>>, vector<1x1x16xf32>
    %397 = vector.shape_cast %396 : vector<1x1x16xf32> to vector<1x16xf32>
    %c8_i32_280 = arith.constant 8 : i32
    %398 = arith.muli %arg0, %c8_i32_280 : i32
    %c1_i32_281 = arith.constant 1 : i32
    %399 = arith.addi %398, %c1_i32_281 : i32
    %400 = arith.index_cast %399 : i32 to index
    %c2_282 = arith.constant 2 : index
    %401 = memref.load %arg1[%400, %c2_282] : memref<16x4xi32, #tpu.memory_space<smem>>
    %c32_i32_283 = arith.constant 32 : i32
    %402 = arith.addi %c32_i32_283, %401 : i32
    %403 = arith.index_cast %402 : i32 to index
    %c0_284 = arith.constant 0 : index
    %c0_285 = arith.constant 0 : index
    %404 = vector.load %arg2[%403, %c0_284, %c0_285] : memref<64x1x16xf32, #tpu.memory_space<vmem>>, vector<1x1x16xf32>
    %405 = vector.shape_cast %404 : vector<1x1x16xf32> to vector<1x16xf32>
    %c8_i32_286 = arith.constant 8 : i32
    %406 = arith.muli %arg0, %c8_i32_286 : i32
    %c2_i32_287 = arith.constant 2 : i32
    %407 = arith.addi %406, %c2_i32_287 : i32
    %408 = arith.index_cast %407 : i32 to index
    %c2_288 = arith.constant 2 : index
    %409 = memref.load %arg1[%408, %c2_288] : memref<16x4xi32, #tpu.memory_space<smem>>
    %c32_i32_289 = arith.constant 32 : i32
    %410 = arith.addi %c32_i32_289, %409 : i32
    %411 = arith.index_cast %410 : i32 to index
    %c0_290 = arith.constant 0 : index
    %c0_291 = arith.constant 0 : index
    %412 = vector.load %arg2[%411, %c0_290, %c0_291] : memref<64x1x16xf32, #tpu.memory_space<vmem>>, vector<1x1x16xf32>
    %413 = vector.shape_cast %412 : vector<1x1x16xf32> to vector<1x16xf32>
    %c8_i32_292 = arith.constant 8 : i32
    %414 = arith.muli %arg0, %c8_i32_292 : i32
    %c3_i32_293 = arith.constant 3 : i32
    %415 = arith.addi %414, %c3_i32_293 : i32
    %416 = arith.index_cast %415 : i32 to index
    %c2_294 = arith.constant 2 : index
    %417 = memref.load %arg1[%416, %c2_294] : memref<16x4xi32, #tpu.memory_space<smem>>
    %c32_i32_295 = arith.constant 32 : i32
    %418 = arith.addi %c32_i32_295, %417 : i32
    %419 = arith.index_cast %418 : i32 to index
    %c0_296 = arith.constant 0 : index
    %c0_297 = arith.constant 0 : index
    %420 = vector.load %arg2[%419, %c0_296, %c0_297] : memref<64x1x16xf32, #tpu.memory_space<vmem>>, vector<1x1x16xf32>
    %421 = vector.shape_cast %420 : vector<1x1x16xf32> to vector<1x16xf32>
    %c8_i32_298 = arith.constant 8 : i32
    %422 = arith.muli %arg0, %c8_i32_298 : i32
    %c4_i32_299 = arith.constant 4 : i32
    %423 = arith.addi %422, %c4_i32_299 : i32
    %424 = arith.index_cast %423 : i32 to index
    %c2_300 = arith.constant 2 : index
    %425 = memref.load %arg1[%424, %c2_300] : memref<16x4xi32, #tpu.memory_space<smem>>
    %c32_i32_301 = arith.constant 32 : i32
    %426 = arith.addi %c32_i32_301, %425 : i32
    %427 = arith.index_cast %426 : i32 to index
    %c0_302 = arith.constant 0 : index
    %c0_303 = arith.constant 0 : index
    %428 = vector.load %arg2[%427, %c0_302, %c0_303] : memref<64x1x16xf32, #tpu.memory_space<vmem>>, vector<1x1x16xf32>
    %429 = vector.shape_cast %428 : vector<1x1x16xf32> to vector<1x16xf32>
    %c8_i32_304 = arith.constant 8 : i32
    %430 = arith.muli %arg0, %c8_i32_304 : i32
    %c5_i32_305 = arith.constant 5 : i32
    %431 = arith.addi %430, %c5_i32_305 : i32
    %432 = arith.index_cast %431 : i32 to index
    %c2_306 = arith.constant 2 : index
    %433 = memref.load %arg1[%432, %c2_306] : memref<16x4xi32, #tpu.memory_space<smem>>
    %c32_i32_307 = arith.constant 32 : i32
    %434 = arith.addi %c32_i32_307, %433 : i32
    %435 = arith.index_cast %434 : i32 to index
    %c0_308 = arith.constant 0 : index
    %c0_309 = arith.constant 0 : index
    %436 = vector.load %arg2[%435, %c0_308, %c0_309] : memref<64x1x16xf32, #tpu.memory_space<vmem>>, vector<1x1x16xf32>
    %437 = vector.shape_cast %436 : vector<1x1x16xf32> to vector<1x16xf32>
    %c8_i32_310 = arith.constant 8 : i32
    %438 = arith.muli %arg0, %c8_i32_310 : i32
    %c6_i32_311 = arith.constant 6 : i32
    %439 = arith.addi %438, %c6_i32_311 : i32
    %440 = arith.index_cast %439 : i32 to index
    %c2_312 = arith.constant 2 : index
    %441 = memref.load %arg1[%440, %c2_312] : memref<16x4xi32, #tpu.memory_space<smem>>
    %c32_i32_313 = arith.constant 32 : i32
    %442 = arith.addi %c32_i32_313, %441 : i32
    %443 = arith.index_cast %442 : i32 to index
    %c0_314 = arith.constant 0 : index
    %c0_315 = arith.constant 0 : index
    %444 = vector.load %arg2[%443, %c0_314, %c0_315] : memref<64x1x16xf32, #tpu.memory_space<vmem>>, vector<1x1x16xf32>
    %445 = vector.shape_cast %444 : vector<1x1x16xf32> to vector<1x16xf32>
    %c8_i32_316 = arith.constant 8 : i32
    %446 = arith.muli %arg0, %c8_i32_316 : i32
    %c7_i32_317 = arith.constant 7 : i32
    %447 = arith.addi %446, %c7_i32_317 : i32
    %448 = arith.index_cast %447 : i32 to index
    %c2_318 = arith.constant 2 : index
    %449 = memref.load %arg1[%448, %c2_318] : memref<16x4xi32, #tpu.memory_space<smem>>
    %c32_i32_319 = arith.constant 32 : i32
    %450 = arith.addi %c32_i32_319, %449 : i32
    %451 = arith.index_cast %450 : i32 to index
    %c0_320 = arith.constant 0 : index
    %c0_321 = arith.constant 0 : index
    %452 = vector.load %arg2[%451, %c0_320, %c0_321] : memref<64x1x16xf32, #tpu.memory_space<vmem>>, vector<1x1x16xf32>
    %453 = vector.shape_cast %452 : vector<1x1x16xf32> to vector<1x16xf32>
    %454 = tpu.concatenate %397, %405, %413, %421, %429, %437, %445, %453 in 0 : vector<1x16xf32>, vector<1x16xf32>, vector<1x16xf32>, vector<1x16xf32>, vector<1x16xf32>, vector<1x16xf32>, vector<1x16xf32>, vector<1x16xf32> -> vector<8x16xf32>
    %c8_i32_322 = arith.constant 8 : i32
    %455 = arith.muli %arg0, %c8_i32_322 : i32
    %c0_i32_323 = arith.constant 0 : i32
    %456 = arith.addi %455, %c0_i32_323 : i32
    %457 = arith.index_cast %456 : i32 to index
    %c3_324 = arith.constant 3 : index
    %458 = memref.load %arg1[%457, %c3_324] : memref<16x4xi32, #tpu.memory_space<smem>>
    %c32_i32_325 = arith.constant 32 : i32
    %459 = arith.addi %c32_i32_325, %458 : i32
    %460 = arith.index_cast %459 : i32 to index
    %c0_326 = arith.constant 0 : index
    %c0_327 = arith.constant 0 : index
    %461 = vector.load %arg2[%460, %c0_326, %c0_327] : memref<64x1x16xf32, #tpu.memory_space<vmem>>, vector<1x1x16xf32>
    %462 = vector.shape_cast %461 : vector<1x1x16xf32> to vector<1x16xf32>
    %c8_i32_328 = arith.constant 8 : i32
    %463 = arith.muli %arg0, %c8_i32_328 : i32
    %c1_i32_329 = arith.constant 1 : i32
    %464 = arith.addi %463, %c1_i32_329 : i32
    %465 = arith.index_cast %464 : i32 to index
    %c3_330 = arith.constant 3 : index
    %466 = memref.load %arg1[%465, %c3_330] : memref<16x4xi32, #tpu.memory_space<smem>>
    %c32_i32_331 = arith.constant 32 : i32
    %467 = arith.addi %c32_i32_331, %466 : i32
    %468 = arith.index_cast %467 : i32 to index
    %c0_332 = arith.constant 0 : index
    %c0_333 = arith.constant 0 : index
    %469 = vector.load %arg2[%468, %c0_332, %c0_333] : memref<64x1x16xf32, #tpu.memory_space<vmem>>, vector<1x1x16xf32>
    %470 = vector.shape_cast %469 : vector<1x1x16xf32> to vector<1x16xf32>
    %c8_i32_334 = arith.constant 8 : i32
    %471 = arith.muli %arg0, %c8_i32_334 : i32
    %c2_i32_335 = arith.constant 2 : i32
    %472 = arith.addi %471, %c2_i32_335 : i32
    %473 = arith.index_cast %472 : i32 to index
    %c3_336 = arith.constant 3 : index
    %474 = memref.load %arg1[%473, %c3_336] : memref<16x4xi32, #tpu.memory_space<smem>>
    %c32_i32_337 = arith.constant 32 : i32
    %475 = arith.addi %c32_i32_337, %474 : i32
    %476 = arith.index_cast %475 : i32 to index
    %c0_338 = arith.constant 0 : index
    %c0_339 = arith.constant 0 : index
    %477 = vector.load %arg2[%476, %c0_338, %c0_339] : memref<64x1x16xf32, #tpu.memory_space<vmem>>, vector<1x1x16xf32>
    %478 = vector.shape_cast %477 : vector<1x1x16xf32> to vector<1x16xf32>
    %c8_i32_340 = arith.constant 8 : i32
    %479 = arith.muli %arg0, %c8_i32_340 : i32
    %c3_i32_341 = arith.constant 3 : i32
    %480 = arith.addi %479, %c3_i32_341 : i32
    %481 = arith.index_cast %480 : i32 to index
    %c3_342 = arith.constant 3 : index
    %482 = memref.load %arg1[%481, %c3_342] : memref<16x4xi32, #tpu.memory_space<smem>>
    %c32_i32_343 = arith.constant 32 : i32
    %483 = arith.addi %c32_i32_343, %482 : i32
    %484 = arith.index_cast %483 : i32 to index
    %c0_344 = arith.constant 0 : index
    %c0_345 = arith.constant 0 : index
    %485 = vector.load %arg2[%484, %c0_344, %c0_345] : memref<64x1x16xf32, #tpu.memory_space<vmem>>, vector<1x1x16xf32>
    %486 = vector.shape_cast %485 : vector<1x1x16xf32> to vector<1x16xf32>
    %c8_i32_346 = arith.constant 8 : i32
    %487 = arith.muli %arg0, %c8_i32_346 : i32
    %c4_i32_347 = arith.constant 4 : i32
    %488 = arith.addi %487, %c4_i32_347 : i32
    %489 = arith.index_cast %488 : i32 to index
    %c3_348 = arith.constant 3 : index
    %490 = memref.load %arg1[%489, %c3_348] : memref<16x4xi32, #tpu.memory_space<smem>>
    %c32_i32_349 = arith.constant 32 : i32
    %491 = arith.addi %c32_i32_349, %490 : i32
    %492 = arith.index_cast %491 : i32 to index
    %c0_350 = arith.constant 0 : index
    %c0_351 = arith.constant 0 : index
    %493 = vector.load %arg2[%492, %c0_350, %c0_351] : memref<64x1x16xf32, #tpu.memory_space<vmem>>, vector<1x1x16xf32>
    %494 = vector.shape_cast %493 : vector<1x1x16xf32> to vector<1x16xf32>
    %c8_i32_352 = arith.constant 8 : i32
    %495 = arith.muli %arg0, %c8_i32_352 : i32
    %c5_i32_353 = arith.constant 5 : i32
    %496 = arith.addi %495, %c5_i32_353 : i32
    %497 = arith.index_cast %496 : i32 to index
    %c3_354 = arith.constant 3 : index
    %498 = memref.load %arg1[%497, %c3_354] : memref<16x4xi32, #tpu.memory_space<smem>>
    %c32_i32_355 = arith.constant 32 : i32
    %499 = arith.addi %c32_i32_355, %498 : i32
    %500 = arith.index_cast %499 : i32 to index
    %c0_356 = arith.constant 0 : index
    %c0_357 = arith.constant 0 : index
    %501 = vector.load %arg2[%500, %c0_356, %c0_357] : memref<64x1x16xf32, #tpu.memory_space<vmem>>, vector<1x1x16xf32>
    %502 = vector.shape_cast %501 : vector<1x1x16xf32> to vector<1x16xf32>
    %c8_i32_358 = arith.constant 8 : i32
    %503 = arith.muli %arg0, %c8_i32_358 : i32
    %c6_i32_359 = arith.constant 6 : i32
    %504 = arith.addi %503, %c6_i32_359 : i32
    %505 = arith.index_cast %504 : i32 to index
    %c3_360 = arith.constant 3 : index
    %506 = memref.load %arg1[%505, %c3_360] : memref<16x4xi32, #tpu.memory_space<smem>>
    %c32_i32_361 = arith.constant 32 : i32
    %507 = arith.addi %c32_i32_361, %506 : i32
    %508 = arith.index_cast %507 : i32 to index
    %c0_362 = arith.constant 0 : index
    %c0_363 = arith.constant 0 : index
    %509 = vector.load %arg2[%508, %c0_362, %c0_363] : memref<64x1x16xf32, #tpu.memory_space<vmem>>, vector<1x1x16xf32>
    %510 = vector.shape_cast %509 : vector<1x1x16xf32> to vector<1x16xf32>
    %c8_i32_364 = arith.constant 8 : i32
    %511 = arith.muli %arg0, %c8_i32_364 : i32
    %c7_i32_365 = arith.constant 7 : i32
    %512 = arith.addi %511, %c7_i32_365 : i32
    %513 = arith.index_cast %512 : i32 to index
    %c3_366 = arith.constant 3 : index
    %514 = memref.load %arg1[%513, %c3_366] : memref<16x4xi32, #tpu.memory_space<smem>>
    %c32_i32_367 = arith.constant 32 : i32
    %515 = arith.addi %c32_i32_367, %514 : i32
    %516 = arith.index_cast %515 : i32 to index
    %c0_368 = arith.constant 0 : index
    %c0_369 = arith.constant 0 : index
    %517 = vector.load %arg2[%516, %c0_368, %c0_369] : memref<64x1x16xf32, #tpu.memory_space<vmem>>, vector<1x1x16xf32>
    %518 = vector.shape_cast %517 : vector<1x1x16xf32> to vector<1x16xf32>
    %519 = tpu.concatenate %462, %470, %478, %486, %494, %502, %510, %518 in 0 : vector<1x16xf32>, vector<1x16xf32>, vector<1x16xf32>, vector<1x16xf32>, vector<1x16xf32>, vector<1x16xf32>, vector<1x16xf32>, vector<1x16xf32> -> vector<8x16xf32>
    %520 = arith.mulf %64, %129 : vector<8x16xf32>
    %521 = arith.mulf %194, %259 : vector<8x16xf32>
    %522 = arith.mulf %194, %324 : vector<8x16xf32>
    %523 = arith.mulf %389, %259 : vector<8x16xf32>
    %524 = arith.mulf %389, %324 : vector<8x16xf32>
    %525 = arith.mulf %454, %519 : vector<8x16xf32>
    %526 = tpu.concatenate %520, %521, %522, %523, %524, %525 in 1 : vector<8x16xf32>, vector<8x16xf32>, vector<8x16xf32>, vector<8x16xf32>, vector<8x16xf32>, vector<8x16xf32> -> vector<8x96xf32>
    %c0_370 = arith.constant 0 : index
    %c0_371 = arith.constant 0 : index
    %527 = vector.load %arg3[%c0_370, %c0_371] : memref<8x96xf32, #tpu.memory_space<vmem>>, vector<8x96xf32>
    tpu.vector_store %arg3[%c0_370, %c0_371], %526 {strides = array<i32>} : memref<8x96xf32, #tpu.memory_space<vmem>>, vector<8x96xf32>,
    return
  }
  func.func @transform_0(%arg0: i32, %arg1: memref<16x4xi32, #tpu.memory_space<smem>>) -> (i32, i32, i32) {
    %c0_i32 = arith.constant 0 : i32
    %c0_i32_0 = arith.constant 0 : i32
    %c0_i32_1 = arith.constant 0 : i32
    %c0_i32_2 = arith.constant 0 : i32
    return %c0_i32, %c0_i32_0, %c0_i32_1 : i32, i32, i32
  }
  func.func @transform_1(%arg0: i32, %arg1: memref<16x4xi32, #tpu.memory_space<smem>>) -> (i32, i32) {
    %c0_i32 = arith.constant 0 : i32
    %c0_i32_0 = arith.constant 0 : i32
    return %arg0, %c0_i32 : i32, i32
  }
}

</mosaic_0001>

<bundles_post_ra>
// kernel: tpu_custom_call.1
= control target key start
LH: loop header
LB: loop body
LE: loop exit
PB: predicated region body
PF: predicated region fallthrough
CT: control target
= control target key end

     0   :  { %s1014_s12 = smov [#allocation3]   ;;  %s1430_s0 = inlined_call_operand.vmem [shape: s32[16,4], index: 0, kind: input, shape index: {}]   ;;  %s1431_s1 = inlined_call_operand.vmem [shape: f32[64,1,16], index: 1, kind: input, shape index: {}]   ;;  %s1432_s2 = inlined_call_operand.hbm [shape: f32[16,96], index: 2, kind: output, shape index: {}]  }
   0x1   :  { %1458 = sst [smem:[#allocation31_spill]] %s1432_s2  ;;  %s8_s11 = sshll.u32 %s1430_s0, 4  ;;  %s9_s11 = int_to_ptr.vmem [resolvable:$true] %s8_s11 }
   0x2   :  { %11 = dma.vmem_to_smem %s9_s11, 256, %s1014_s12, [#allocation2] }
   0x3   :  { %992 = dma.done.wait [#allocation2], 256 }
   0x4   :  { %993 = vsyncadd [#allocation2], 4294967040 }
   0x5   :  { %14 = sfence }
   0x6   :  { %15 = vsyncpa [#allocation5], 0 }
   0x7   :  { %17 = vsyncpa [#allocation5 + $0x1], 0  ;;  %s1038_s13 = smov 0   ;;  %s1040_s14 = smov 0  }
   0x8   :  { %s1042_s15 = smov 0   ;;  %s1044_s16 = smov 0  }
   0x9 LB: > { %1459 = sst [smem:[#allocation8_spill]] %s1000_s13  ;;  %s1059_s0 = sadd.s32 4294967295, %s1012_s16   ;;  %s1012_s16 = sphi %s1044_s16, %s1505_s16   ;;  %s1008_s15 = sphi %s1042_s15, %s1508_s15   ;;  %s1004_s14 = sphi %s1040_s14, %s1507_s14   ;;  %s1000_s13 = sphi %s1038_s13, %s1506_s13  }
   0xa   : > { %1460 = sst [smem:[#allocation9_spill]] %s1004_s14  ;;  %s764_s17 = sadd.s32 4294967294, %s1012_s16  }
   0xb   : > { %1461 = sst [smem:[#allocation10_spill]] %s1008_s15  ;;  %s1063_s18 = sadd.s32 1, %s1012_s16  }
   0xc   : > { %1462 = sst [smem:[#allocation11_spill]] %s1012_s16  ;;  %s51_s19 = sadd.s32 1, %s1008_s15 }
   0xd   : > { %1463 = sst [smem:[#allocation12_spill]] %s1059_s0  ;;  %s48_s20 = ssub.s32 %s1012_s16, %s1063_s18 }
   0xe   : > { %1464 = sst [smem:[#allocation13_spill]] %s1063_s18  ;;  %p61_p0 = scmp.ne.s32.totalorder %s1008_s15, %s1004_s14 }
   0xf   : > { %p49_p1 = scmp.eq.s32.totalorder %s48_s20, 0  ;;  %p62_p2 = scmp.eq.s32.totalorder %s1059_s0, 1 }
  0x10   : > { %p67_p3 = scmp.ne.s32.totalorder %s1004_s14, %s1000_s13  ;;  %p68_p4 = scmp.eq.s32.totalorder %s764_s17, 1 }
  0x11   : > { %s1074_s21 = scalar_select %p49_p1, %s1008_s15, %s51_s19  }
  0x12   : > { %p1076_p5 = por %p62_p2, %p61_p0  ;;  %p1080_p6 = por %p68_p4, %p67_p3 }
  0x13   : > { %1465 = sst [smem:[#allocation14_spill]] %s1074_s21  ;;  %p766_p7 = scmp.ge.s32.totalorder %s1012_s16, 1 }
  0x14   : > { %s1466_s22 = scalar_select %p1076_p5, 1, 0 }
  0x15   : > { %s1468_s23 = scalar_select %p1080_p6, 1, 0 }
  0x16   : > { %1467 = sst [smem:[#allocation15_spill]] %s1466_s22  ;;  %p89_p8 = scmp.lt.s32.totalorder %s1012_s16, 3 }
  0x17   : > { %1469 = sst [smem:[#allocation16_spill]] %s1468_s23 }
  0x18   : > { %p90_p9 = pnand %p766_p7, %p89_p8 }
  0x1a   : > { %93 = sbr.rel (%p90_p9) target bundleno = 227 (0xe3), region = 24 }
  0x1f   : > { %s1087_s24 = sshll.u32 %s1059_s0, 10  ;;  %vm165_vm0 = vcmask 1040384   ;;  %vm167_vm1 = vcmask 1041408   ;;  %vm169_vm2 = vcmask 1042432   ;;  %vm171_vm3 = vcmask 1043456  }
  0x20   : > { %s106_s25 = sld [smem:[#allocation3 + %s1087_s24]]  ;;  %s1091_s26 = sadd.s32 128, %s1087_s24  ;;  %vm173_vm4 = vcmask 1044480   ;;  %vm175_vm5 = vcmask 1045504   ;;  %vm177_vm6 = vcmask 1046528   ;;  %vm593_vm7 = vcmask 130048  }
  0x21   : > { %s111_s27 = sld [smem:[#allocation3 + %s1091_s26]]  ;;  %s1095_s28 = sadd.s32 256, %s1087_s24  ;;  %vm595_vm8 = vcmask 261120   ;;  %vm597_vm9 = vcmask 392192   ;;  %vm599_vm10 = vcmask 523264   ;;  %vm601_vm11 = vcmask 654336  }
  0x22   : > { %s116_s29 = sld [smem:[#allocation3 + %s1095_s28]]  ;;  %s1099_s30 = sadd.s32 384, %s1087_s24  ;;  %vm603_vm12 = vcmask 785408  }
  0x23   : > { %s121_s3 = sld [smem:[#allocation3 + %s1099_s30]]  ;;  %s1103_s4 = sadd.s32 512, %s1087_s24 }
  0x24   : > { %s126_s5 = sld [smem:[#allocation3 + %s1103_s4]]  ;;  %s1107_s6 = sadd.s32 640, %s1087_s24 }
  0x25   : > { %s131_s7 = sld [smem:[#allocation3 + %s1107_s6]]  ;;  %s1111_s8 = sadd.s32 768, %s1087_s24 }
  0x26   : > { %s136_s9 = sld [smem:[#allocation3 + %s1111_s8]]  ;;  %s1120_s17 = sadd.s32 896, %s1087_s24 }
  0x27   : > { %s1117_s12 = scalar_lea.vmem %s1431_s1, %s111_s27  ;;  %s141_s15 = sld [smem:[#allocation3 + %s1120_s17]] }
  0x28   : > { %1470 = sst [smem:[#allocation17_spill]] %s1117_s12  ;;  %s1125_s21 = scalar_lea.vmem %s1431_s1, %s116_s29  ;;  %v887_v1 = vld [vmem:[%s1117_s12 + $0x20] ss:$0 sm:$0xff] }
  0x29   : > { %1471 = sst [smem:[#allocation18_spill]] %s1125_s21  ;;  %s1131_s13 = scalar_lea.vmem %s1431_s1, %s121_s3  ;;  %v888_v2 = vld [vmem:[%s1125_s21 + $0x20] ss:$0 sm:$0xff] }
  0x2a   : > { %1472 = sst [smem:[#allocation19_spill]] %s1131_s13  ;;  %s1136_s11 = scalar_lea.vmem %s1431_s1, %s106_s25  ;;  %v889_v3 = vld [vmem:[%s1131_s13 + $0x20] ss:$0 sm:$0xff] }
  0x2b   : > { %1473 = sst [smem:[#allocation20_spill]] %s1136_s11  ;;  %s1141_s29 = scalar_lea.vmem %s1431_s1, %s126_s5  ;;  %v777_v0 = vld [vmem:[%s1136_s11 + $0x20] sm:$0x1] }
  0x2c   : > { %1474 = sst [smem:[#allocation21_spill]] %s1141_s29  ;;  %s1146_s18 = scalar_lea.vmem %s1431_s1, %s131_s7  ;;  %v284_v4 = vsel %vm165_vm0, %v777_v0, %v887_v1  ;;  %v890_v6 = vld [vmem:[%s1141_s29 + $0x20] ss:$0 sm:$0xff] }
  0x2d   : > { %1475 = sst [smem:[#allocation22_spill]] %s1146_s18  ;;  %s1151_s10 = scalar_lea.vmem %s1431_s1, %s136_s9  ;;  %v285_v5 = vsel %vm167_vm1, %v284_v4, %v888_v2  ;;  %v891_v8 = vld [vmem:[%s1146_s18 + $0x20] ss:$0 sm:$0xff] }
  0x2e   : > { %1476 = sst [smem:[#allocation23_spill]] %s1151_s10  ;;  %s1157_s5 = scalar_lea.vmem %s1431_s1, %s141_s15  ;;  %v286_v7 = vsel %vm169_vm2, %v285_v5, %v889_v3  ;;  %v892_v10 = vld [vmem:[%s1151_s10 + $0x20] ss:$0 sm:$0xff] }
  0x2f   : > { %1477 = sst [smem:[#allocation24_spill]] %s1157_s5  ;;  %s291_s22 = sadd.s32 2, %s1087_s24  ;;  %v287_v9 = vsel %vm171_vm3, %v286_v7, %v890_v6  ;;  %v893_v12 = vld [vmem:[%s1157_s5 + $0x20] ss:$0 sm:$0xff] }
  0x30   : > { %s295_s7 = sadd.s32 2, %s1091_s26  ;;  %s292_s9 = sld [smem:[#allocation3 + %s291_s22]]  ;;  %v288_v13 = vsel %vm173_vm4, %v287_v9, %v891_v8 }
  0x31   : > { %s299_s27 = sadd.s32 2, %s1095_s28  ;;  %s296_s15 = sld [smem:[#allocation3 + %s295_s7]]  ;;  %v289_v18 = vsel %vm175_vm5, %v288_v13, %v892_v10 }
  0x32   : > { %s303_s19 = sadd.s32 2, %s1099_s30  ;;  %s300_s20 = sld [smem:[#allocation3 + %s299_s27]]  ;;  %v1235_v25 = vsel %vm177_vm6, %v289_v18, %v893_v12 }
  0x33   : > { %s307_s23 = sadd.s32 2, %s1103_s4  ;;  %s304_s3 = sld [smem:[#allocation3 + %s303_s19]] }
  0x34   : > { %s311_s16 = sadd.s32 2, %s1107_s6  ;;  %s308_s25 = sld [smem:[#allocation3 + %s307_s23]] }
  0x35   : > { %s315_s2 = sadd.s32 2, %s1111_s8  ;;  %s312_s22 = sld [smem:[#allocation3 + %s311_s16]] }
  0x36   : > { %s319_s0 = sadd.s32 2, %s1120_s17  ;;  %s1179_s29 = scalar_lea.vmem %s1431_s1, %s292_s9 }
  0x37   : > { %s316_s27 = sld [smem:[#allocation3 + %s315_s2]]  ;;  %v294_v11 = vld [vmem:[%s1179_s29] sm:$0x1]  ;;  %s1186_s23 = scalar_lea.vmem %s1431_s1, %s296_s15 }
  0x38   : > { %s320_s13 = sld [smem:[#allocation3 + %s319_s0]]  ;;  %s1193_s9 = scalar_lea.vmem %s1431_s1, %s300_s20  ;;  %v894_v14 = vld [vmem:[%s1186_s23] ss:$0 sm:$0xff] }
  0x39   : > { %s351_s2 = sadd.s32 3, %s1087_s24  ;;  %s1200_s18 = scalar_lea.vmem %s1431_s1, %s304_s3  ;;  %v895_v15 = vld [vmem:[%s1193_s9] ss:$0 sm:$0xff]  ;;  %v344_v17 = vsel %vm165_vm0, %v294_v11, %v894_v14 }
  0x3a   : > { %s352_s0 = sld [smem:[#allocation3 + %s351_s2]]  ;;  %s1206_s5 = scalar_lea.vmem %s1431_s1, %s308_s25  ;;  %v896_v16 = vld [vmem:[%s1200_s18] ss:$0 sm:$0xff]  ;;  %v345_v20 = vsel %vm167_vm1, %v344_v17, %v895_v15 }
  0x3b   : > { %s355_s20 = sadd.s32 3, %s1091_s26  ;;  %s1215_s16 = scalar_lea.vmem %s1431_s1, %s312_s22  ;;  %v897_v19 = vld [vmem:[%s1206_s5] ss:$0 sm:$0xff]  ;;  %v346_v22 = vsel %vm169_vm2, %v345_v20, %v896_v16 }
  0x3c   : > { %s356_s25 = sld [smem:[#allocation3 + %s355_s20]]  ;;  %v898_v21 = vld [vmem:[%s1215_s16] ss:$0 sm:$0xff]  ;;  %s359_s15 = sadd.s32 3, %s1095_s28  ;;  %v347_v24 = vsel %vm171_vm3, %v346_v22, %v897_v19 }
  0x3d   : > { %s1222_s7 = scalar_lea.vmem %s1431_s1, %s316_s27  ;;  %s360_s20 = sld [smem:[#allocation3 + %s359_s15]]  ;;  %v348_v27 = vsel %vm173_vm4, %v347_v24, %v898_v21  ;;  %v922_v44 = vld [vmem:[%s1186_s23 + $0x20] ss:$0 sm:$0xff] }
  0x3e   : > { %1478 = sst [smem:[#allocation25_spill]] %s1222_s7  ;;  %s1230_s22 = scalar_lea.vmem %s1431_s1, %s320_s13  ;;  %v899_v23 = vld [vmem:[%s1222_s7] ss:$0 sm:$0xff] }
  0x3f   : > { %1479 = sst [smem:[#allocation26_spill]] %s1230_s22  ;;  %v900_v26 = vld [vmem:[%s1230_s22] ss:$0 sm:$0xff]  ;;  %s363_s27 = sadd.s32 3, %s1099_s30  ;;  %v349_v28 = vsel %vm175_vm5, %v348_v27, %v899_v23 }
  0x40   : > { %s367_s3 = sadd.s32 3, %s1103_s4  ;;  %s1245_s2 = scalar_lea.vmem %s1431_s1, %s352_s0  ;;  %v1248_v29 = vsel %vm177_vm6, %v349_v28, %v900_v26  ;;  %v793_v47 = vld [vmem:[%s1179_s29 + $0x20] sm:$0x1] }
  0x41   : > { %1480 = sst [smem:[#allocation27_spill]] %s1245_s2  ;;  %v354_v30 = vld [vmem:[%s1245_s2] sm:$0x1]  ;;  %s371_s10 = sadd.s32 3, %s1107_s6  ;;  %v568_v31 = vmul.f32 %v1248_v29, %v1235_v25  ;;  %v508_v60 = vsel %vm165_vm0, %v793_v47, %v922_v44 }
  0x42   : > { %s364_s19 = sld [smem:[#allocation3 + %s363_s27]]  ;;  %s1255_s12 = scalar_lea.vmem %s1431_s1, %s356_s25  ;;  %v923_v51 = vld [vmem:[%s1193_s9 + $0x20] ss:$0 sm:$0xff] }
  0x43   : > { %s368_s15 = sld [smem:[#allocation3 + %s367_s3]]  ;;  %s375_s0 = sadd.s32 3, %s1111_s8  ;;  %v901_v32 = vld [vmem:[%s1255_s12] ss:$0 sm:$0xff]  ;;  %v509_v6 = vsel %vm167_vm1, %v508_v60, %v923_v51 }
  0x44   : > { %1481 = sst [smem:[#allocation28_spill]] %s1255_s12  ;;  %s379_s27 = sadd.s32 3, %s1120_s17  ;;  %v404_v34 = vsel %vm165_vm0, %v354_v30, %v901_v32  ;;  %v924_v59 = vld [vmem:[%s1200_s18 + $0x20] ss:$0 sm:$0xff] }
  0x45   : > { %s372_s22 = sld [smem:[#allocation3 + %s371_s10]]  ;;  %s1265_s2 = scalar_lea.vmem %s1431_s1, %s360_s20  ;;  %v510_v15 = vsel %vm169_vm2, %v509_v6, %v924_v59  ;;  %v925_v17 = vld [vmem:[%s1206_s5 + $0x20] ss:$0 sm:$0xff] }
  0x46   : > { %1482 = sst [smem:[#allocation29_spill]] %s1265_s2  ;;  %s1015_s7 = smov 16   ;;  %v902_v33 = vld [vmem:[%s1265_s2] ss:$0 sm:$0xff]  ;;  %v511_v24 = vsel %vm171_vm3, %v510_v15, %v925_v17 }
  0x47   : > { %s376_s3 = sld [smem:[#allocation3 + %s375_s0]]  ;;  %574 = vrot.lane.b32.xlu0 %v568_v31, %s1015_s7  ;;  %s179_s11 = sadd.s32 1, %s1087_s24  ;;  %v405_v36 = vsel %vm167_vm1, %v404_v34, %v902_v33  ;;  %v926_v18 = vld [vmem:[%s1215_s16 + $0x20] ss:$0 sm:$0xff] }
  0x48   : > { %s380_s21 = sld [smem:[#allocation3 + %s379_s27]]  ;;  %s1273_s12 = scalar_lea.vmem %s1431_s1, %s364_s19  ;;  %v512_v26 = vsel %vm173_vm4, %v511_v24, %v926_v18 }
  0x49   : > { %s180_s14 = sld [smem:[#allocation3 + %s179_s11]]  ;;  %s1278_s0 = scalar_lea.vmem %s1431_s1, %s368_s15  ;;  %v903_v35 = vld [vmem:[%s1273_s12] ss:$0 sm:$0xff] }
  0x4a   : > { %s183_s7 = sadd.s32 1, %s1091_s26  ;;  %v904_v37 = vld [vmem:[%s1278_s0] ss:$0 sm:$0xff]  ;;  %v406_v39 = vsel %vm169_vm2, %v405_v36, %v903_v35  ;;  %s187_s15 = sadd.s32 1, %s1095_s28 }
  0x4b   : > { %s1286_s2 = scalar_lea.vmem %s1431_s1, %s372_s22  ;;  %s184_s19 = sld [smem:[#allocation3 + %s183_s7]]  ;;  %v407_v40 = vsel %vm171_vm3, %v406_v39, %v904_v37  ;;  %v931_v30 = vld [vmem:[%s1273_s12 + $0x20] ss:$0 sm:$0xff] }
  0x4c   : > { %v905_v38 = vld [vmem:[%s1286_s2] ss:$0 sm:$0xff]  ;;  %s191_s11 = sadd.s32 1, %s1099_s30  ;;  %s188_s26 = sld [smem:[#allocation3 + %s187_s15]] }
  0x4d   : > { %s1296_s20 = scalar_lea.vmem %s1431_s1, %s376_s3  ;;  %s192_s28 = sld [smem:[#allocation3 + %s191_s11]]  ;;  %v408_v43 = vsel %vm173_vm4, %v407_v40, %v905_v38  ;;  %v932_v31 = vld [vmem:[%s1278_s0 + $0x20] ss:$0 sm:$0xff] }
  0x4e   : > { %1483 = sst [smem:[#allocation30_spill]] %s1296_s20  ;;  %s1302_s7 = scalar_lea.vmem %s1431_s1, %s380_s21  ;;  %v906_v41 = vld [vmem:[%s1296_s20] ss:$0 sm:$0xff] }
  0x4f   : > { %s181_s3 = scalar_lea.vmem %s1431_s1, %s180_s14  ;;  %s195_s24 = sadd.s32 1, %s1103_s4  ;;  %v907_v42 = vld [vmem:[%s1302_s7] ss:$0 sm:$0xff]  ;;  %v409_v49 = vsel %vm175_vm5, %v408_v43, %v906_v41 }
  0x50   : > { %s196_s15 = sld [smem:[#allocation3 + %s195_s24]]  ;;  %s199_s25 = sadd.s32 1, %s1107_s6  ;;  %v182_v45 = vld [vmem:[%s181_s3] sm:$0x1]  ;;  %v410_v56 = vsel %vm177_vm6, %v409_v49, %v907_v42 }
  0x51   : > { %s185_s22 = scalar_lea.vmem %s1431_s1, %s184_s19  ;;  %s200_s13 = sld [smem:[#allocation3 + %s199_s25]]  ;;  %v785_v46 = vld [vmem:[%s181_s3 + $0x20] sm:$0x1]  ;;  %v569_v2 = vmul.f32 %v410_v56, %v1235_v25 }
  0x52   : > { %s203_s11 = sadd.s32 1, %s1111_s8  ;;  %s207_s20 = sadd.s32 1, %s1120_s17  ;;  %v914_v48 = vld [vmem:[%s185_s22 + $0x20] ss:$0 sm:$0xff] }
  0x53   : > { %s189_s30 = scalar_lea.vmem %s1431_s1, %s188_s26  ;;  %s204_s6 = sld [smem:[#allocation3 + %s203_s11]]  ;;  %v921_v50 = vld [vmem:[%s185_s22] ss:$0 sm:$0xff]  ;;  %v456_v54 = vsel %vm165_vm0, %v785_v46, %v914_v48 }
  0x54   : > { %s193_s19 = scalar_lea.vmem %s1431_s1, %s192_s28  ;;  %s208_s24 = sld [smem:[#allocation3 + %s207_s20]]  ;;  %v908_v52 = vld [vmem:[%s189_s30] ss:$0 sm:$0xff]  ;;  %v232_v55 = vsel %vm165_vm0, %v182_v45, %v921_v50 }
  0x55   : > { %v909_v53 = vld [vmem:[%s193_s19] ss:$0 sm:$0xff]  ;;  %v233_v61 = vsel %vm167_vm1, %v232_v55, %v908_v52  ;;  %s1484_s21 = sld [smem:[#allocation25_spill]]  ;;  %s1016_s4 = smov 32  }
  0x56   : > { %s197_s29 = scalar_lea.vmem %s1431_s1, %s196_s15  ;;  %v915_v57 = vld [vmem:[%s189_s30 + $0x20] ss:$0 sm:$0xff]  ;;  %v234_v63 = vsel %vm169_vm2, %v233_v61, %v909_v53  ;;  %s1485_s22 = sld [smem:[#allocation27_spill]]  ;;  %578 = vrot.lane.b32.xlu0 %v569_v2, %s1016_s4 }
  0x57   : > { %v916_v58 = vld [vmem:[%s193_s19 + $0x20] ss:$0 sm:$0xff]  ;;  %s201_s26 = scalar_lea.vmem %s1431_s1, %s200_s13  ;;  %v457_v1 = vsel %vm167_vm1, %v456_v54, %v915_v57  ;;  %s1486_s13 = sld [smem:[#allocation28_spill]] }
  0x58   : > { %v910_v62 = vld [vmem:[%s197_s29] ss:$0 sm:$0xff]  ;;  %v458_v5 = vsel %vm169_vm2, %v457_v1, %v916_v58  ;;  %s1487_s11 = sld [smem:[#allocation29_spill]]  ;;  %s1017_s5 = smov 48  }
  0x59   : > { %v911_v0 = vld [vmem:[%s201_s26] ss:$0 sm:$0xff]  ;;  %s205_s18 = scalar_lea.vmem %s1431_s1, %s204_s6  ;;  %v235_v7 = vsel %vm171_vm3, %v234_v63, %v910_v62  ;;  %s1488_s14 = sld [smem:[#allocation26_spill]] }
  0x5a   : > { %v917_v3 = vld [vmem:[%s197_s29 + $0x20] ss:$0 sm:$0xff]  ;;  %s209_s10 = scalar_lea.vmem %s1431_s1, %s208_s24  ;;  %v236_v9 = vsel %vm173_vm4, %v235_v7, %v911_v0  ;;  %s1489_s30 = sld [smem:[#allocation30_spill]] }
  0x5b   : > { %v918_v4 = vld [vmem:[%s201_s26 + $0x20] ss:$0 sm:$0xff]  ;;  %v459_v11 = vsel %vm171_vm3, %v458_v5, %v917_v3  ;;  %s1490_s16 = sld [smem:[#allocation17_spill]]  ;;  %s1019_s24 = smov 80  }
  0x5c   : > { %v912_v8 = vld [vmem:[%s205_s18] ss:$0 sm:$0xff]  ;;  %v460_v14 = vsel %vm173_vm4, %v459_v11, %v918_v4  ;;  %s1491_s6 = sld [smem:[#allocation18_spill]] }
  0x5d   : > { %v913_v10 = vld [vmem:[%s209_s10] ss:$0 sm:$0xff]  ;;  %v237_v16 = vsel %vm175_vm5, %v236_v9, %v912_v8  ;;  %s1492_s23 = sld [smem:[#allocation20_spill]] }
  0x5e   : > { %v919_v12 = vld [vmem:[%s205_s18 + $0x20] ss:$0 sm:$0xff]  ;;  %v238_v19 = vsel %vm177_vm6, %v237_v16, %v913_v10  ;;  %s1493_s27 = sld [smem:[#allocation19_spill]] }
  0x5f   : > { %v920_v13 = vld [vmem:[%s209_s10 + $0x20] ss:$0 sm:$0xff]  ;;  %v461_v20 = vsel %vm175_vm5, %v460_v14, %v919_v12  ;;  %s1494_s12 = sld [smem:[#allocation21_spill]] }
  0x60   : > { %v927_v21 = vld [vmem:[%s1484_s21 + $0x20] ss:$0 sm:$0xff]  ;;  %v462_v23 = vsel %vm177_vm6, %v461_v20, %v920_v13  ;;  %s1495_s0 = sld [smem:[#allocation22_spill]] }
  0x61   : > { %v801_v22 = vld [vmem:[%s1485_s22 + $0x20] sm:$0x1]  ;;  %v570_v25 = vmul.f32 %v462_v23, %v1248_v29  ;;  %v513_v35 = vsel %vm175_vm5, %v512_v26, %v927_v21  ;;  %v571_v40 = vmul.f32 %v462_v23, %v410_v56  ;;  %s1497_s19 = sld [smem:[#allocation24_spill]] }
  0x62   : > { %v929_v27 = vld [vmem:[%s1486_s13 + $0x20] ss:$0 sm:$0xff]  ;;  %s1498_s8 = sld [smem:[#allocation9_spill]] }
  0x63   : > { %v930_v28 = vld [vmem:[%s1487_s11 + $0x20] ss:$0 sm:$0xff]  ;;  %582 = vrot.lane.b32.xlu1 %v570_v25, %s1017_s5  ;;  %v560_v34 = vsel %vm165_vm0, %v801_v22, %v929_v27  ;;  %s1499_s17 = sld [smem:[#allocation12_spill]] }
  0x64   : > { %v928_v32 = vld [vmem:[%s1488_s14 + $0x20] ss:$0 sm:$0xff]  ;;  %v561_v37 = vsel %vm167_vm1, %v560_v34, %v930_v28  ;;  %s1500_s3 = sld [smem:[#allocation31_spill]] }
  0x65   : > { %v933_v33 = vld [vmem:[%s1286_s2 + $0x20] ss:$0 sm:$0xff]  ;;  %v562_v38 = vsel %vm169_vm2, %v561_v37, %v931_v30  ;;  %v514_v41 = vsel %vm177_vm6, %v513_v35, %v928_v32  ;;  %s1496_s2 = sld [smem:[#allocation23_spill]] }
  0x66   : > { %v934_v36 = vld [vmem:[%s1489_s30 + $0x20] ss:$0 sm:$0xff]  ;;  %v563_v39 = vsel %vm171_vm3, %v562_v38, %v932_v31 }
  0x67   : > { %v935_v29 = vld [vmem:[%s1302_s7 + $0x20] ss:$0 sm:$0xff]  ;;  %v564_v42 = vsel %vm173_vm4, %v563_v39, %v933_v33  ;;  %s1018_s7 = smov 64  }
  0x68   : > { %v565_v43 = vsel %vm175_vm5, %v564_v42, %v934_v36  ;;  %v880_v46 = vld [vmem:[%s1490_s16] ss:$0 sm:$0xff]  ;;  %s101_s29 = sand.u32 1, %s1498_s8  }
  0x69   : > { %v566_v44 = vsel %vm177_vm6, %v565_v43, %v935_v29  ;;  %v881_v47 = vld [vmem:[%s1491_s6] ss:$0 sm:$0xff]  ;;  %s767_s9 = sshll.u32 %s101_s29, 3  ;;  %s810_s20 = sshll.u32 %s1499_s17, 3 }
  0x6a   : > { %v572_v45 = vmul.f32 %v566_v44, %v514_v41  ;;  %v108_v48 = vld [vmem:[%s1492_s23] sm:$0x1]  ;;  %s616_s18 = scalar_lea.hbm %s1500_s3, %s810_s20  ;;  %s103_s15 = scalar_lea.vmem [#allocation4], %s767_s9 }
  0x6b   : > { %586 = vrot.lane.b32.xlu1 %v571_v40, %s1018_s7  ;;  %v882_v49 = vld [vmem:[%s1493_s27] ss:$0 sm:$0xff]  ;;  %v166_v52 = vsel %vm165_vm0, %v108_v48, %v880_v46  ;;  %s618_s25 = sshll.u32 %s103_s15, 4  ;;  %s620_s21 = sshll.u32 %s616_s18, 4  ;;  %s619_s25 = int_to_ptr.vmem [resolvable:$true] %s618_s25  ;;  %s621_s21 = int_to_ptr.hbm [resolvable:$true] %s620_s21 }
  0x6c   : > { %590 = vrot.lane.b32.xlu2 %v572_v45, %s1019_s24  ;;  %v883_v50 = vld [vmem:[%s1494_s12] ss:$0 sm:$0xff]  ;;  %v168_v54 = vsel %vm167_vm1, %v166_v52, %v881_v47  ;;  %s606_s22 = scalar_lea.sflag [#allocation5], %s101_s29  ;;  %s962_s13 = sshra.s32 %s621_s21, 4  ;;  %s963_s13 = int_to_ptr.hbm [resolvable:$true] %s962_s13 }
  0x6d   : > { %v884_v51 = vld [vmem:[%s1495_s0] ss:$0 sm:$0xff]  ;;  %v170_v56 = vsel %vm169_vm2, %v168_v54, %v882_v49  ;;  %s964_s11 = scalar_lea.hbm %s963_s13, 8  ;;  %s968_s30 = scalar_lea.hbm %s1500_s3, 16 }
  0x6e   : > { %v885_v53 = vld [vmem:[%s1496_s2] ss:$0 sm:$0xff]  ;;  %v172_v57 = vsel %vm171_vm3, %v170_v56, %v883_v50  ;;  %p965_p10 = scmp.ne.s32.totalorder %s963_s13, %s964_s11  ;;  %p969_p13 = scmp.lt.s32.totalorder %s963_s13, %s1500_s3 }
  0x6f   : > { %v886_v55 = vld [vmem:[%s1497_s19] ss:$0 sm:$0xff]  ;;  %v174_v58 = vsel %vm173_vm4, %v172_v57, %v884_v51  ;;  %p970_p0 = scmp.lt.s32.totalorder %s968_s30, %s964_s11 }
  0x70   : > { %v176_v59 = vsel %vm175_vm5, %v174_v58, %v885_v53  ;;  %p966_p11 = pnand %p965_p10, %p1076_p5 }
  0x71   : > { %v178_v60 = vsel %vm177_vm6, %v176_v59, %v886_v55  ;;  %p971_p1 = por %p970_p0, %p969_p13 }
  0x72   : > { %v567_v61 = vmul.f32 %v238_v19, %v178_v60  ;;  %p967_p12 = pneg %p966_p11 }
  0x74   : > { %p972_p2 = pnand %p971_p1, %p967_p12 }
  0xb9   : > { %v575_v62 = vpop.permute.xlu0 %574 }
  0xba   : > { %v594_v1 = vsel %vm593_vm7, %v567_v61, %v575_v62 }
  0xc6   : > { %v591_v4 = vpop.permute.xlu2 %590 }
  0xc8   : > { %v579_v0 = vpop.permute.xlu0 %578 }
  0xc9   : > { %v596_v2 = vsel %vm595_vm8, %v594_v1, %v579_v0 }
  0xd5   : > { %v583_v63 = vpop.permute.xlu1 %582 }
  0xd6   : > { %v598_v3 = vsel %vm597_vm9, %v596_v2, %v583_v63 }
  0xdd   : > { %v587_v5 = vpop.permute.xlu1 %586 }
  0xde   : > { %v600_v6 = vsel %vm599_vm10, %v598_v3, %v587_v5 }
  0xdf   : > { %v602_v7 = vsel %vm601_vm11, %v600_v6, %v591_v4 }
  0xe0   : > { %604 = vst.msk [vmem:[%s103_s15] sm:$0xff] %vm603_vm12, %v602_v7 }
  0xe1   : > { %975 = shalt.err (!%p972_p2)
}
  0xe2   : > { %835 = dma.vmem_to_hbm [thread:$0]  (%p1076_p5), %s619_s25, 128, %s621_s21, %s606_s22  }
  0xe3 PF: > { %s1502_s6 = sld [smem:[#allocation11_spill]] }
  0xe4   : > { %s1503_s23 = sld [smem:[#allocation8_spill]] }
  0xe9   : > { %p841_p3 = scmp.ge.s32.totalorder %s1502_s6, 2 }
  0xea   : > { %s632_s12 = sand.u32 1, %s1503_s23  }
  0xeb   : > { %p838_p4 = pnand %p841_p3, %p1080_p6  ;;  %s633_s0 = scalar_lea.sflag [#allocation5], %s632_s12 }
  0xed   : > { %p839_p7 = pneg %p838_p4 }
  0xef   : > { %995 = dma.done.wait (%p839_p7), %s633_s0, 128  }
  0xf0   : > { %997 = vsyncadd (%p839_p7), %s633_s0, 4294967168  ;;  %s1505_s16 = sld [smem:[#allocation13_spill]] }
  0xf1   : > { %s1506_s13 = sld [smem:[#allocation9_spill]] }
  0xf2   : > { %s1507_s14 = sld [smem:[#allocation10_spill]] }
  0xf3   : > { %s1508_s15 = sld [smem:[#allocation14_spill]] }
  0xf6   : > { %p20_p8 = scmp.ge.s32.totalorder %s1505_s16, 4  }
  0xf8   :  { %22 = sbr.rel (!%p20_p8) target bundleno = 9 (0x9), region = 120 }
  0xfd   :  { %639 = vsyncpa [#allocation5], 1 }
  0xfe   :  { %641 = vsyncpa [#allocation5 + $0x1], 1 }

</bundles_post_ra>
